<compile_context>
chip_gen: v7x
topology: tpu7x:2x2x1
jax: 0.10.0
libtpu: 0.0.40
codegen_flags: <defaults>
</compile_context>

<pallas_src>
import math

import jax
import jax.numpy as jnp
from jax import lax
from jax.experimental import pallas as pl
from jax.experimental.pallas import tpu as pltpu


# ----------------------------- in-kernel math helpers -----------------------------

def _erf(x):
    # Abramowitz & Stegun 7.1.26 polynomial approximation of erf (|err| <= 1.5e-7),
    # built only from ops that lower cleanly in Mosaic (exp / mul / add / select).
    p = 0.3275911
    a1, a2, a3, a4, a5 = (0.254829592, -0.284496736, 1.421413741,
                          -1.453152027, 1.061405429)
    s = jnp.where(x >= 0.0, 1.0, -1.0)
    ax = jnp.abs(x)
    t = 1.0 / (1.0 + p * ax)
    poly = ((((a5 * t + a4) * t + a3) * t + a2) * t + a1) * t
    return s * (1.0 - poly * jnp.exp(-ax * ax))


def _gelu_exact(x):
    # Matches PyTorch nn.GELU() default (erf-based, not the tanh approximation).
    return 0.5 * x * (1.0 + _erf(x * (1.0 / math.sqrt(2.0))))


# ----------------------------- the fused kernel -----------------------------

def _build_kernel(H, W, dim, hidden, dim_out, lpad, identity_res, eps=1e-5):
    S = H * W

    def _group_norm1(h, gamma, beta):
        # GroupNorm(num_groups=1): one-pass stats (sum & sum-of-squares) over (C, S),
        # per-channel affine.  gamma/beta are (C, 1).
        n = float(h.shape[0] * h.shape[1])
        s1 = jnp.sum(h, axis=(0, 1), keepdims=True)
        s2 = jnp.sum(h * h, axis=(0, 1), keepdims=True)
        mean = s1 * (1.0 / n)
        var = s2 * (1.0 / n) - mean * mean
        return (h - mean) * lax.rsqrt(var + eps) * gamma + beta

    def _tap_offset(dy, dx):
        # flat-spatial offset of tap (dy, dx) relative to the start of a padded row
        return lpad - (W + 1) + dy * W + dx

    def _body(x_ref, cond_ref, masks_ref,
              dw_w_ref, dw_b_ref, gn1_g_ref, gn1_b_ref,
              w1_ref, b1_ref, gn2_g_ref, gn2_b_ref, w2_ref, b2_ref,
              res_w_ref, res_b_ref,
              out_ref, pa, pb, im):
        masks = masks_ref[...]                    # (2, S)
        mask_l = masks[0:1, :]                    # zero where x == 0     (dx == 0 taps)
        mask_r = masks[1:2, :]                    # zero where x == W - 1 (dx == 2 taps)

        def _masked(slab, dx):
            if dx == 0:
                return slab * mask_l
            if dx == 2:
                return slab * mask_r
            return slab

        # ---- zero ONLY the halo lanes of the padded scratch rows; the interior is
        #      fully overwritten every step (never zero the whole buffer). ----
        za = jnp.zeros((dim, lpad), jnp.float32)
        zb = jnp.zeros((hidden, lpad), jnp.float32)
        pa[:, pl.ds(0, lpad)] = za
        pa[:, pl.ds(lpad + S, lpad)] = za
        pb[:, pl.ds(0, lpad)] = zb
        pb[:, pl.ds(lpad + S, lpad)] = zb

        x2 = x_ref[0]                             # (dim, S) f32
        pa[:, pl.ds(lpad, S)] = x2

        # ---- ds_conv: depthwise 3x3 (groups=dim) + bias + per-channel (time+cond)
        #      conditioning (MLPs hoisted into the wrapper). ----
        xpad = pa[...]                            # (dim, lpad + S + lpad)
        dww = dw_w_ref[...]                       # (dim, 9), tap index = 3*dy + dx
        h = jnp.zeros((dim, S), jnp.float32)
        for dy in range(3):
            for dx in range(3):
                t = 3 * dy + dx
                off = _tap_offset(dy, dx)
                slab = _masked(xpad[:, off:off + S], dx)
                h = h + slab * dww[:, t:t + 1]
        h = h + dw_b_ref[...] + cond_ref[0]

        # ---- GroupNorm(1) -> write straight into the padded scratch interior ----
        pa[:, pl.ds(lpad, S)] = _group_norm1(h, gn1_g_ref[...], gn1_b_ref[...])

        # ---- conv1 (dim -> hidden): masked im2col + ONE bf16 MXU matmul, K = 9*dim ----
        g1pad = pa[...]
        for dy in range(3):
            for dx in range(3):
                t = 3 * dy + dx
                off = _tap_offset(dy, dx)
                im[pl.ds(t * dim, dim), :] = _masked(g1pad[:, off:off + S], dx)
        h1 = jnp.dot(w1_ref[...],
                     im[pl.ds(0, 9 * dim), :].astype(jnp.bfloat16),
                     preferred_element_type=jnp.float32) + b1_ref[...]

        # ---- GELU -> GroupNorm(1) -> write into padded scratch interior ----
        pb[:, pl.ds(lpad, S)] = _group_norm1(_gelu_exact(h1),
                                             gn2_g_ref[...], gn2_b_ref[...])

        # ---- conv2 (hidden -> dim_out): masked im2col + ONE bf16 MXU matmul ----
        g2pad = pb[...]
        for dy in range(3):
            for dx in range(3):
                t = 3 * dy + dx
                off = _tap_offset(dy, dx)
                im[pl.ds(t * hidden, hidden), :] = _masked(g2pad[:, off:off + S], dx)
        h2 = jnp.dot(w2_ref[...],
                     im[pl.ds(0, 9 * hidden), :].astype(jnp.bfloat16),
                     preferred_element_type=jnp.float32) + b2_ref[...]

        # ---- residual: 1x1 conv, or plain identity add when dim == dim_out ----
        if identity_res:
            out_ref[0] = h2 + x2
        else:
            res = jnp.dot(res_w_ref[...], x2.astype(jnp.bfloat16),
                          preferred_element_type=jnp.float32) + res_b_ref[...]
            out_ref[0] = h2 + res

    if identity_res:
        def kernel(x_ref, cond_ref, masks_ref,
                   dw_w_ref, dw_b_ref, gn1_g_ref, gn1_b_ref,
                   w1_ref, b1_ref, gn2_g_ref, gn2_b_ref, w2_ref, b2_ref,
                   out_ref, pa, pb, im):
            _body(x_ref, cond_ref, masks_ref, dw_w_ref, dw_b_ref,
                  gn1_g_ref, gn1_b_ref, w1_ref, b1_ref, gn2_g_ref, gn2_b_ref,
                  w2_ref, b2_ref, None, None, out_ref, pa, pb, im)
    else:
        def kernel(x_ref, cond_ref, masks_ref,
                   dw_w_ref, dw_b_ref, gn1_g_ref, gn1_b_ref,
                   w1_ref, b1_ref, gn2_g_ref, gn2_b_ref, w2_ref, b2_ref,
                   res_w_ref, res_b_ref,
                   out_ref, pa, pb, im):
            _body(x_ref, cond_ref, masks_ref, dw_w_ref, dw_b_ref,
                  gn1_g_ref, gn1_b_ref, w1_ref, b1_ref, gn2_g_ref, gn2_b_ref,
                  w2_ref, b2_ref, res_w_ref, res_b_ref, out_ref, pa, pb, im)

    return kernel


# ----------------------------- wrapper -----------------------------

def _full_spec(a):
    nd = a.ndim
    return pl.BlockSpec(a.shape, lambda b, _nd=nd: (0,) * _nd)


def convnext_block_forward(x_nchw, time_emb, cond_emb, params):
    N, dim, H, W = x_nchw.shape
    hidden = params["w1"].shape[0]
    dim_out = params["w2"].shape[0]
    S = H * W
    lpad = ((W + 1 + 127) // 128) * 128          # lane-aligned halo >= W + 1
    bw = 2 * lpad + S                            # padded flat-row width
    identity_res = params["res_w"] is None       # nn.Identity() case

    x3 = x_nchw.astype(jnp.float32).reshape(N, dim, S)

    # time/cond MLPs hoisted out of the kernel: one batched GEMM each (torch Linear
    # weight layout is (out, in), so apply weight.T), combined into one (N, dim, 1).
    tcond = (jax.nn.gelu(time_emb.astype(jnp.float32), approximate=False)
             @ params["mlp_w"].T + params["mlp_b"])
    ccond = (jax.nn.silu(cond_emb.astype(jnp.float32))
             @ params["mlpc_w"].T + params["mlpc_b"])
    cond = (tcond + ccond)[:, :, None]           # (N, dim, 1)

    # column masks that kill the left/right wrap-around of flat-spatial taps
    col = jnp.arange(S, dtype=jnp.int32) % W
    masks = jnp.stack([(col != 0).astype(jnp.float32),
                       (col != W - 1).astype(jnp.float32)], axis=0)   # (2, S)

    # weight re-layouts (done once, outside the kernel); MXU operands stored as bf16
    dw_w = params["dw_w"].reshape(dim, 9).astype(jnp.float32)          # [c, 3*dy+dx]
    dw_b = params["dw_b"].reshape(dim, 1).astype(jnp.float32)
    gn1_g = params["gn1_g"].reshape(dim, 1).astype(jnp.float32)
    gn1_b = params["gn1_b"].reshape(dim, 1).astype(jnp.float32)
    w1r = jnp.transpose(params["w1"], (0, 2, 3, 1)).reshape(
        hidden, 9 * dim).astype(jnp.bfloat16)                          # [co, t*dim+ci]
    b1 = params["b1"].reshape(hidden, 1).astype(jnp.float32)
    gn2_g = params["gn2_g"].reshape(hidden, 1).astype(jnp.float32)
    gn2_b = params["gn2_b"].reshape(hidden, 1).astype(jnp.float32)
    w2r = jnp.transpose(params["w2"], (0, 2, 3, 1)).reshape(
        dim_out, 9 * hidden).astype(jnp.bfloat16)
    b2 = params["b2"].reshape(dim_out, 1).astype(jnp.float32)

    inputs = [x3, cond, masks, dw_w, dw_b, gn1_g, gn1_b,
              w1r, b1, gn2_g, gn2_b, w2r, b2]
    if not identity_res:
        res_w = params["res_w"].reshape(dim_out, dim).astype(jnp.bfloat16)
        res_b = params["res_b"].reshape(dim_out, 1).astype(jnp.float32)
        inputs += [res_w, res_b]

    in_specs = ([pl.BlockSpec((1, dim, S), lambda b: (b, 0, 0)),
                 pl.BlockSpec((1, dim, 1), lambda b: (b, 0, 0))]
                + [_full_spec(a) for a in inputs[2:]])

    scratch_shapes = [
        pltpu.VMEM((dim, bw), jnp.float32),                  # padded x / GN1 output
        pltpu.VMEM((hidden, bw), jnp.float32),               # padded GN2(GELU(conv1))
        pltpu.VMEM((9 * max(dim, hidden), S), jnp.float32),  # shared im2col slab
    ]

    # explicit scoped-VMEM limit (v5e default is only 16 MiB), capped at v7x physical
    param_bytes = sum(int(a.size) * a.dtype.itemsize for a in inputs[2:])
    block_bytes = 4 * (dim * S + dim + dim_out * S)
    scratch_bytes = 4 * (dim * bw + hidden * bw + 9 * max(dim, hidden) * S)
    est = scratch_bytes + 2 * (block_bytes + param_bytes)
    vmem_limit = int(min(max(2 * est, 16 * 1024 * 1024), 64 * 1024 * 1024))

    kernel = _build_kernel(H, W, dim, hidden, dim_out, lpad, identity_res)

    out = pl.pallas_call(
        kernel,
        out_shape=jax.ShapeDtypeStruct((N, dim_out, S), jnp.float32),
        grid_spec=pltpu.PrefetchScalarGridSpec(
            num_scalar_prefetch=0,
            grid=(N,),
            in_specs=in_specs,
            out_specs=pl.BlockSpec((1, dim_out, S), lambda b: (b, 0, 0)),
            scratch_shapes=scratch_shapes),
        compiler_params=pltpu.CompilerParams(
            dimension_semantics=("parallel",),           # each batch element is independent
            vmem_limit_bytes=vmem_limit),
    )(*inputs)

    return out.reshape(N, dim_out, H, W)                 # already NCHW


# ----------------------------- deterministic parameter init -----------------------------

def init_params(key, dim, dim_out, time_emb_dim, cond_emb_dim, mult=2):
    # Canonical (PyTorch-like) shapes; the wrapper derives the kernel layouts.
    hidden = dim_out * mult
    ks = jax.random.split(key, 12)

    def rnd(k, shape, scale=0.1):
        return (scale * jax.random.normal(k, shape)).astype(jnp.float32)

    p = {
        "dw_w": rnd(ks[0], (dim, 1, 3, 3)),                 # Conv2d(dim, dim, 3, groups=dim)
        "dw_b": rnd(ks[1], (dim,)),
        "mlp_w": rnd(ks[2], (dim, time_emb_dim)),           # Linear(time_emb_dim, dim).weight
        "mlp_b": rnd(ks[3], (dim,)),
        "mlpc_w": rnd(ks[4], (dim, cond_emb_dim)),          # Linear(cond_emb_dim, dim).weight
        "mlpc_b": rnd(ks[5], (dim,)),
        "gn1_g": jnp.ones((dim,), jnp.float32),             # GroupNorm(1, dim) default affine
        "gn1_b": jnp.zeros((dim,), jnp.float32),
        "w1": rnd(ks[6], (hidden, dim, 3, 3)),              # Conv2d(dim, hidden, 3)
        "b1": rnd(ks[7], (hidden,)),
        "gn2_g": jnp.ones((hidden,), jnp.float32),
        "gn2_b": jnp.zeros((hidden,), jnp.float32),
        "w2": rnd(ks[8], (dim_out, hidden, 3, 3)),          # Conv2d(hidden, dim_out, 3)
        "b2": rnd(ks[9], (dim_out,)),
    }
    if dim != dim_out:
        p["res_w"] = rnd(ks[10], (dim_out, dim, 1, 1))      # Conv2d(dim, dim_out, 1)
        p["res_b"] = rnd(ks[11], (dim_out,))
    else:
        p["res_w"] = None                                   # nn.Identity()
        p["res_b"] = None
    return p


# ----------------------------- pure-JAX f32 reference (for self-check) -----------------------------

def reference_forward(x, time_emb, cond_emb, p):
    dim = x.shape[1]

    def conv2d(h, w, b, groups=1):
        out = lax.conv_general_dilated(
            h, w, window_strides=(1, 1), padding="SAME",
            dimension_numbers=("NCHW", "OIHW", "NCHW"),
            feature_group_count=groups, precision=lax.Precision.HIGHEST)
        return out + b.reshape(1, -1, 1, 1)

    def gn1(h, g, b, eps=1e-5):
        mean = jnp.mean(h, axis=(1, 2, 3), keepdims=True)
        var = jnp.mean((h - mean) ** 2, axis=(1, 2, 3), keepdims=True)
        return ((h - mean) * lax.rsqrt(var + eps) * g.reshape(1, -1, 1, 1)
                + b.reshape(1, -1, 1, 1))

    h = conv2d(x, p["dw_w"], p["dw_b"], groups=dim)
    tc = jax.nn.gelu(time_emb, approximate=False) @ p["mlp_w"].T + p["mlp_b"]
    cc = jax.nn.silu(cond_emb) @ p["mlpc_w"].T + p["mlpc_b"]
    h = h + tc[:, :, None, None] + cc[:, :, None, None]
    h = gn1(h, p["gn1_g"], p["gn1_b"])
    h = conv2d(h, p["w1"], p["b1"])
    h = jax.nn.gelu(h, approximate=False)
    h = gn1(h, p["gn2_g"], p["gn2_b"])
    h = conv2d(h, p["w2"], p["b2"])
    res = conv2d(x, p["res_w"], p["res_b"]) if p["res_w"] is not None else x
    return h + res


# ----------------------------- demo -----------------------------

if __name__ == "__main__":
    key = jax.random.PRNGKey(0)
    kx, kt, kc, kp = jax.random.split(key, 4)

    N, dim, H, W = 2, 4, 16, 16
    dim_out, mult = 8, 2
    time_emb_dim, cond_emb_dim = 8, 8

    x = jax.random.normal(kx, (N, dim, H, W), dtype=jnp.float32)       # NCHW, like PyTorch
    time_emb = jax.random.normal(kt, (N, time_emb_dim), dtype=jnp.float32)
    cond_emb = jax.random.normal(kc, (N, cond_emb_dim), dtype=jnp.float32)

    params = init_params(kp, dim, dim_out, time_emb_dim, cond_emb_dim, mult)

    out = convnext_block_forward(x, time_emb, cond_emb, params)
    out = jax.block_until_ready(out)
    assert out.shape == (N, dim_out, H, W), out.shape

    # Loose-tolerance self check against a pure-JAX f32 reference: the kernel uses
    # bf16 MXU operands and one-pass GroupNorm stats, so it is close but not bit-exact.
    ref = reference_forward(x, time_emb, cond_emb, params)
    max_err = float(jnp.max(jnp.abs(out - ref)))
    assert max_err < 1e-1, f"max abs err vs reference: {max_err}"

    print("KERNEL_OK")
</pallas_src>

<mosaic_0001>
module attributes {stable_mosaic.version = 11 : i64} {
  func.func @kernel(%arg0: i32, %arg1: memref<1x4x256xf32, #tpu.memory_space<vmem>>, %arg2: memref<1x4x1xf32, #tpu.memory_space<vmem>>, %arg3: memref<2x256xf32, #tpu.memory_space<vmem>>, %arg4: memref<4x9xf32, #tpu.memory_space<vmem>>, %arg5: memref<4x1xf32, #tpu.memory_space<vmem>>, %arg6: memref<4x1xf32, #tpu.memory_space<vmem>>, %arg7: memref<4x1xf32, #tpu.memory_space<vmem>>, %arg8: memref<16x36xbf16, #tpu.memory_space<vmem>>, %arg9: memref<16x1xf32, #tpu.memory_space<vmem>>, %arg10: memref<16x1xf32, #tpu.memory_space<vmem>>, %arg11: memref<16x1xf32, #tpu.memory_space<vmem>>, %arg12: memref<8x144xbf16, #tpu.memory_space<vmem>>, %arg13: memref<8x1xf32, #tpu.memory_space<vmem>>, %arg14: memref<8x4xbf16, #tpu.memory_space<vmem>>, %arg15: memref<8x1xf32, #tpu.memory_space<vmem>>, %arg16: memref<1x8x256xf32, #tpu.memory_space<vmem>>, %arg17: memref<4x512xf32, #tpu.memory_space<vmem>>, %arg18: memref<16x512xf32, #tpu.memory_space<vmem>>, %arg19: memref<144x256xf32, #tpu.memory_space<vmem>>) attributes {dimension_semantics = [#tpu.dimension_semantics<parallel>], iteration_bounds = array<i64: 2>, scalar_prefetch = 0 : i64, scratch_operands = 3 : i64, tpu.core_type = #tpu.core_type<tc>, window_params = [{transform_indices = @transform_0, window_bounds = array<i64: 1, 4, 256>}, {transform_indices = @transform_1, window_bounds = array<i64: 1, 4, 1>}, {pipeline_mode = #tpu.pipeline_mode<synchronous>, transform_indices = @transform_2, window_bounds = array<i64: 2, 256>}, {pipeline_mode = #tpu.pipeline_mode<synchronous>, transform_indices = @transform_3, window_bounds = array<i64: 4, 9>}, {pipeline_mode = #tpu.pipeline_mode<synchronous>, transform_indices = @transform_4, window_bounds = array<i64: 4, 1>}, {pipeline_mode = #tpu.pipeline_mode<synchronous>, transform_indices = @transform_5, window_bounds = array<i64: 4, 1>}, {pipeline_mode = #tpu.pipeline_mode<synchronous>, transform_indices = @transform_6, window_bounds = array<i64: 4, 1>}, {pipeline_mode = #tpu.pipeline_mode<synchronous>, transform_indices = @transform_7, window_bounds = array<i64: 16, 36>}, {pipeline_mode = #tpu.pipeline_mode<synchronous>, transform_indices = @transform_8, window_bounds = array<i64: 16, 1>}, {pipeline_mode = #tpu.pipeline_mode<synchronous>, transform_indices = @transform_9, window_bounds = array<i64: 16, 1>}, {pipeline_mode = #tpu.pipeline_mode<synchronous>, transform_indices = @transform_10, window_bounds = array<i64: 16, 1>}, {pipeline_mode = #tpu.pipeline_mode<synchronous>, transform_indices = @transform_11, window_bounds = array<i64: 8, 144>}, {pipeline_mode = #tpu.pipeline_mode<synchronous>, transform_indices = @transform_12, window_bounds = array<i64: 8, 1>}, {pipeline_mode = #tpu.pipeline_mode<synchronous>, transform_indices = @transform_13, window_bounds = array<i64: 8, 4>}, {pipeline_mode = #tpu.pipeline_mode<synchronous>, transform_indices = @transform_14, window_bounds = array<i64: 8, 1>}, {transform_indices = @transform_15, window_bounds = array<i64: 1, 8, 256>}]} {
    %c0 = arith.constant 0 : index
    %c0_0 = arith.constant 0 : index
    %0 = vector.load %arg3[%c0, %c0_0] : memref<2x256xf32, #tpu.memory_space<vmem>>, vector<2x256xf32>
    %1 = vector.extract_strided_slice %0 {offsets = [0, 0], sizes = [1, 256], strides = [1, 1]} : vector<2x256xf32> to vector<1x256xf32>
    %2 = vector.extract_strided_slice %0 {offsets = [1, 0], sizes = [1, 256], strides = [1, 1]} : vector<2x256xf32> to vector<1x256xf32>
    %cst = arith.constant 0.000000e+00 : f32
    %3 = vector.broadcast %cst : f32 to vector<4x128xf32>
    %cst_1 = arith.constant 0.000000e+00 : f32
    %4 = vector.broadcast %cst_1 : f32 to vector<16x128xf32>
    %c0_2 = arith.constant 0 : index
    %c0_3 = arith.constant 0 : index
    %5 = vector.load %arg17[%c0_2, %c0_3] : memref<4x512xf32, #tpu.memory_space<vmem>>, vector<4x128xf32>
    tpu.vector_store %arg17[%c0_2, %c0_3], %3 {strides = array<i32>} : memref<4x512xf32, #tpu.memory_space<vmem>>, vector<4x128xf32>,
    %c0_4 = arith.constant 0 : index
    %c384 = arith.constant 384 : index
    %6 = vector.load %arg17[%c0_4, %c384] : memref<4x512xf32, #tpu.memory_space<vmem>>, vector<4x128xf32>
    tpu.vector_store %arg17[%c0_4, %c384], %3 {strides = array<i32>} : memref<4x512xf32, #tpu.memory_space<vmem>>, vector<4x128xf32>,
    %c0_5 = arith.constant 0 : index
    %c0_6 = arith.constant 0 : index
    %7 = vector.load %arg18[%c0_5, %c0_6] : memref<16x512xf32, #tpu.memory_space<vmem>>, vector<16x128xf32>
    tpu.vector_store %arg18[%c0_5, %c0_6], %4 {strides = array<i32>} : memref<16x512xf32, #tpu.memory_space<vmem>>, vector<16x128xf32>,
    %c0_7 = arith.constant 0 : index
    %c384_8 = arith.constant 384 : index
    %8 = vector.load %arg18[%c0_7, %c384_8] : memref<16x512xf32, #tpu.memory_space<vmem>>, vector<16x128xf32>
    tpu.vector_store %arg18[%c0_7, %c384_8], %4 {strides = array<i32>} : memref<16x512xf32, #tpu.memory_space<vmem>>, vector<16x128xf32>,
    %c0_9 = arith.constant 0 : index
    %c0_10 = arith.constant 0 : index
    %c0_11 = arith.constant 0 : index
    %9 = vector.load %arg1[%c0_9, %c0_10, %c0_11] : memref<1x4x256xf32, #tpu.memory_space<vmem>>, vector<1x4x256xf32>
    %10 = vector.shape_cast %9 : vector<1x4x256xf32> to vector<4x256xf32>
    %c0_12 = arith.constant 0 : index
    %c128 = arith.constant 128 : index
    %11 = vector.load %arg17[%c0_12, %c128] : memref<4x512xf32, #tpu.memory_space<vmem>>, vector<4x256xf32>
    tpu.vector_store %arg17[%c0_12, %c128], %10 {strides = array<i32>} : memref<4x512xf32, #tpu.memory_space<vmem>>, vector<4x256xf32>,
    %c0_13 = arith.constant 0 : index
    %c0_14 = arith.constant 0 : index
    %12 = vector.load %arg17[%c0_13, %c0_14] : memref<4x512xf32, #tpu.memory_space<vmem>>, vector<4x512xf32>
    %c0_15 = arith.constant 0 : index
    %c0_16 = arith.constant 0 : index
    %13 = vector.load %arg4[%c0_15, %c0_16] : memref<4x9xf32, #tpu.memory_space<vmem>>, vector<4x9xf32>
    %cst_17 = arith.constant 0.000000e+00 : f32
    %14 = vector.broadcast %cst_17 : f32 to vector<4x256xf32>
    %15 = vector.extract_strided_slice %12 {offsets = [0, 111], sizes = [4, 256], strides = [1, 1]} : vector<4x512xf32> to vector<4x256xf32>
    %16 = vector.broadcast %1 : vector<1x256xf32> to vector<4x256xf32>
    %17 = arith.mulf %15, %16 : vector<4x256xf32>
    %18 = vector.extract_strided_slice %13 {offsets = [0, 0], sizes = [4, 1], strides = [1, 1]} : vector<4x9xf32> to vector<4x1xf32>
    %19 = vector.broadcast %18 : vector<4x1xf32> to vector<4x256xf32>
    %20 = arith.mulf %17, %19 : vector<4x256xf32>
    %21 = arith.addf %14, %20 : vector<4x256xf32>
    %22 = vector.extract_strided_slice %12 {offsets = [0, 112], sizes = [4, 256], strides = [1, 1]} : vector<4x512xf32> to vector<4x256xf32>
    %23 = vector.extract_strided_slice %13 {offsets = [0, 1], sizes = [4, 1], strides = [1, 1]} : vector<4x9xf32> to vector<4x1xf32>
    %24 = vector.broadcast %23 : vector<4x1xf32> to vector<4x256xf32>
    %25 = arith.mulf %22, %24 : vector<4x256xf32>
    %26 = arith.addf %21, %25 : vector<4x256xf32>
    %27 = vector.extract_strided_slice %12 {offsets = [0, 113], sizes = [4, 256], strides = [1, 1]} : vector<4x512xf32> to vector<4x256xf32>
    %28 = vector.broadcast %2 : vector<1x256xf32> to vector<4x256xf32>
    %29 = arith.mulf %27, %28 : vector<4x256xf32>
    %30 = vector.extract_strided_slice %13 {offsets = [0, 2], sizes = [4, 1], strides = [1, 1]} : vector<4x9xf32> to vector<4x1xf32>
    %31 = vector.broadcast %30 : vector<4x1xf32> to vector<4x256xf32>
    %32 = arith.mulf %29, %31 : vector<4x256xf32>
    %33 = arith.addf %26, %32 : vector<4x256xf32>
    %34 = vector.extract_strided_slice %12 {offsets = [0, 127], sizes = [4, 256], strides = [1, 1]} : vector<4x512xf32> to vector<4x256xf32>
    %35 = vector.broadcast %1 : vector<1x256xf32> to vector<4x256xf32>
    %36 = arith.mulf %34, %35 : vector<4x256xf32>
    %37 = vector.extract_strided_slice %13 {offsets = [0, 3], sizes = [4, 1], strides = [1, 1]} : vector<4x9xf32> to vector<4x1xf32>
    %38 = vector.broadcast %37 : vector<4x1xf32> to vector<4x256xf32>
    %39 = arith.mulf %36, %38 : vector<4x256xf32>
    %40 = arith.addf %33, %39 : vector<4x256xf32>
    %41 = vector.extract_strided_slice %12 {offsets = [0, 128], sizes = [4, 256], strides = [1, 1]} : vector<4x512xf32> to vector<4x256xf32>
    %42 = vector.extract_strided_slice %13 {offsets = [0, 4], sizes = [4, 1], strides = [1, 1]} : vector<4x9xf32> to vector<4x1xf32>
    %43 = vector.broadcast %42 : vector<4x1xf32> to vector<4x256xf32>
    %44 = arith.mulf %41, %43 : vector<4x256xf32>
    %45 = arith.addf %40, %44 : vector<4x256xf32>
    %46 = vector.extract_strided_slice %12 {offsets = [0, 129], sizes = [4, 256], strides = [1, 1]} : vector<4x512xf32> to vector<4x256xf32>
    %47 = vector.broadcast %2 : vector<1x256xf32> to vector<4x256xf32>
    %48 = arith.mulf %46, %47 : vector<4x256xf32>
    %49 = vector.extract_strided_slice %13 {offsets = [0, 5], sizes = [4, 1], strides = [1, 1]} : vector<4x9xf32> to vector<4x1xf32>
    %50 = vector.broadcast %49 : vector<4x1xf32> to vector<4x256xf32>
    %51 = arith.mulf %48, %50 : vector<4x256xf32>
    %52 = arith.addf %45, %51 : vector<4x256xf32>
    %53 = vector.extract_strided_slice %12 {offsets = [0, 143], sizes = [4, 256], strides = [1, 1]} : vector<4x512xf32> to vector<4x256xf32>
    %54 = vector.broadcast %1 : vector<1x256xf32> to vector<4x256xf32>
    %55 = arith.mulf %53, %54 : vector<4x256xf32>
    %56 = vector.extract_strided_slice %13 {offsets = [0, 6], sizes = [4, 1], strides = [1, 1]} : vector<4x9xf32> to vector<4x1xf32>
    %57 = vector.broadcast %56 : vector<4x1xf32> to vector<4x256xf32>
    %58 = arith.mulf %55, %57 : vector<4x256xf32>
    %59 = arith.addf %52, %58 : vector<4x256xf32>
    %60 = vector.extract_strided_slice %12 {offsets = [0, 144], sizes = [4, 256], strides = [1, 1]} : vector<4x512xf32> to vector<4x256xf32>
    %61 = vector.extract_strided_slice %13 {offsets = [0, 7], sizes = [4, 1], strides = [1, 1]} : vector<4x9xf32> to vector<4x1xf32>
    %62 = vector.broadcast %61 : vector<4x1xf32> to vector<4x256xf32>
    %63 = arith.mulf %60, %62 : vector<4x256xf32>
    %64 = arith.addf %59, %63 : vector<4x256xf32>
    %65 = vector.extract_strided_slice %12 {offsets = [0, 145], sizes = [4, 256], strides = [1, 1]} : vector<4x512xf32> to vector<4x256xf32>
    %66 = vector.broadcast %2 : vector<1x256xf32> to vector<4x256xf32>
    %67 = arith.mulf %65, %66 : vector<4x256xf32>
    %68 = vector.extract_strided_slice %13 {offsets = [0, 8], sizes = [4, 1], strides = [1, 1]} : vector<4x9xf32> to vector<4x1xf32>
    %69 = vector.broadcast %68 : vector<4x1xf32> to vector<4x256xf32>
    %70 = arith.mulf %67, %69 : vector<4x256xf32>
    %71 = arith.addf %64, %70 : vector<4x256xf32>
    %c0_18 = arith.constant 0 : index
    %c0_19 = arith.constant 0 : index
    %72 = vector.load %arg5[%c0_18, %c0_19] : memref<4x1xf32, #tpu.memory_space<vmem>>, vector<4x1xf32>
    %73 = vector.broadcast %72 : vector<4x1xf32> to vector<4x256xf32>
    %74 = arith.addf %71, %73 : vector<4x256xf32>
    %c0_20 = arith.constant 0 : index
    %c0_21 = arith.constant 0 : index
    %c0_22 = arith.constant 0 : index
    %75 = vector.load %arg2[%c0_20, %c0_21, %c0_22] : memref<1x4x1xf32, #tpu.memory_space<vmem>>, vector<1x4x1xf32>
    %76 = vector.shape_cast %75 : vector<1x4x1xf32> to vector<4x1xf32>
    %77 = vector.broadcast %76 : vector<4x1xf32> to vector<4x256xf32>
    %78 = arith.addf %74, %77 : vector<4x256xf32>
    %c0_23 = arith.constant 0 : index
    %c0_24 = arith.constant 0 : index
    %79 = vector.load %arg6[%c0_23, %c0_24] : memref<4x1xf32, #tpu.memory_space<vmem>>, vector<4x1xf32>
    %c0_25 = arith.constant 0 : index
    %c0_26 = arith.constant 0 : index
    %80 = vector.load %arg7[%c0_25, %c0_26] : memref<4x1xf32, #tpu.memory_space<vmem>>, vector<4x1xf32>
    %81 = vector.shape_cast %78 : vector<4x256xf32> to vector<1x4x256xf32>
    %cst_27 = arith.constant dense<0.000000e+00> : vector<1xf32>
    %82 = vector.multi_reduction <add>, %81, %cst_27 [1, 2] : vector<1x4x256xf32> to vector<1xf32>
    %83 = vector.shape_cast %82 : vector<1xf32> to vector<1x1x1xf32>
    %84 = vector.extract %83[0, 0, 0] : f32 from vector<1x1x1xf32>
    %85 = vector.broadcast %84 : f32 to vector<1x1xf32>
    %86 = arith.mulf %78, %78 : vector<4x256xf32>
    %87 = vector.shape_cast %86 : vector<4x256xf32> to vector<1x4x256xf32>
    %cst_28 = arith.constant dense<0.000000e+00> : vector<1xf32>
    %88 = vector.multi_reduction <add>, %87, %cst_28 [1, 2] : vector<1x4x256xf32> to vector<1xf32>
    %89 = vector.shape_cast %88 : vector<1xf32> to vector<1x1x1xf32>
    %90 = vector.extract %89[0, 0, 0] : f32 from vector<1x1x1xf32>
    %91 = vector.broadcast %90 : f32 to vector<1x1xf32>
    %cst_29 = arith.constant 9.765625E-4 : f32
    %92 = vector.broadcast %cst_29 : f32 to vector<1x1xf32>
    %93 = arith.mulf %85, %92 : vector<1x1xf32>
    %cst_30 = arith.constant 9.765625E-4 : f32
    %94 = vector.broadcast %cst_30 : f32 to vector<1x1xf32>
    %95 = arith.mulf %91, %94 : vector<1x1xf32>
    %96 = arith.mulf %93, %93 : vector<1x1xf32>
    %97 = arith.subf %95, %96 : vector<1x1xf32>
    %98 = vector.broadcast %93 : vector<1x1xf32> to vector<4x256xf32>
    %99 = arith.subf %78, %98 : vector<4x256xf32>
    %cst_31 = arith.constant 9.99999974E-6 : f32
    %100 = vector.broadcast %cst_31 : f32 to vector<1x1xf32>
    %101 = arith.addf %97, %100 : vector<1x1xf32>
    %102 = math.rsqrt %101 : vector<1x1xf32>
    %103 = vector.broadcast %102 : vector<1x1xf32> to vector<4x256xf32>
    %104 = arith.mulf %99, %103 : vector<4x256xf32>
    %105 = vector.broadcast %79 : vector<4x1xf32> to vector<4x256xf32>
    %106 = arith.mulf %104, %105 : vector<4x256xf32>
    %107 = vector.broadcast %80 : vector<4x1xf32> to vector<4x256xf32>
    %108 = arith.addf %106, %107 : vector<4x256xf32>
    %c0_32 = arith.constant 0 : index
    %c128_33 = arith.constant 128 : index
    %109 = vector.load %arg17[%c0_32, %c128_33] : memref<4x512xf32, #tpu.memory_space<vmem>>, vector<4x256xf32>
    tpu.vector_store %arg17[%c0_32, %c128_33], %108 {strides = array<i32>} : memref<4x512xf32, #tpu.memory_space<vmem>>, vector<4x256xf32>,
    %c0_34 = arith.constant 0 : index
    %c0_35 = arith.constant 0 : index
    %110 = vector.load %arg17[%c0_34, %c0_35] : memref<4x512xf32, #tpu.memory_space<vmem>>, vector<4x512xf32>
    %111 = vector.extract_strided_slice %110 {offsets = [0, 111], sizes = [4, 256], strides = [1, 1]} : vector<4x512xf32> to vector<4x256xf32>
    %112 = vector.broadcast %1 : vector<1x256xf32> to vector<4x256xf32>
    %113 = arith.mulf %111, %112 : vector<4x256xf32>
    %c0_36 = arith.constant 0 : index
    %c0_37 = arith.constant 0 : index
    %114 = vector.load %arg19[%c0_36, %c0_37] : memref<144x256xf32, #tpu.memory_space<vmem>>, vector<4x256xf32>
    tpu.vector_store %arg19[%c0_36, %c0_37], %113 {strides = array<i32>} : memref<144x256xf32, #tpu.memory_space<vmem>>, vector<4x256xf32>,
    %115 = vector.extract_strided_slice %110 {offsets = [0, 112], sizes = [4, 256], strides = [1, 1]} : vector<4x512xf32> to vector<4x256xf32>
    %c4 = arith.constant 4 : index
    %c0_38 = arith.constant 0 : index
    %116 = vector.load %arg19[%c4, %c0_38] : memref<144x256xf32, #tpu.memory_space<vmem>>, vector<4x256xf32>
    tpu.vector_store %arg19[%c4, %c0_38], %115 {strides = array<i32>} : memref<144x256xf32, #tpu.memory_space<vmem>>, vector<4x256xf32>,
    %117 = vector.extract_strided_slice %110 {offsets = [0, 113], sizes = [4, 256], strides = [1, 1]} : vector<4x512xf32> to vector<4x256xf32>
    %118 = vector.broadcast %2 : vector<1x256xf32> to vector<4x256xf32>
    %119 = arith.mulf %117, %118 : vector<4x256xf32>
    %c8 = arith.constant 8 : index
    %c0_39 = arith.constant 0 : index
    %120 = vector.load %arg19[%c8, %c0_39] : memref<144x256xf32, #tpu.memory_space<vmem>>, vector<4x256xf32>
    tpu.vector_store %arg19[%c8, %c0_39], %119 {strides = array<i32>} : memref<144x256xf32, #tpu.memory_space<vmem>>, vector<4x256xf32>,
    %121 = vector.extract_strided_slice %110 {offsets = [0, 127], sizes = [4, 256], strides = [1, 1]} : vector<4x512xf32> to vector<4x256xf32>
    %122 = vector.broadcast %1 : vector<1x256xf32> to vector<4x256xf32>
    %123 = arith.mulf %121, %122 : vector<4x256xf32>
    %c12 = arith.constant 12 : index
    %c0_40 = arith.constant 0 : index
    %124 = vector.load %arg19[%c12, %c0_40] : memref<144x256xf32, #tpu.memory_space<vmem>>, vector<4x256xf32>
    tpu.vector_store %arg19[%c12, %c0_40], %123 {strides = array<i32>} : memref<144x256xf32, #tpu.memory_space<vmem>>, vector<4x256xf32>,
    %125 = vector.extract_strided_slice %110 {offsets = [0, 128], sizes = [4, 256], strides = [1, 1]} : vector<4x512xf32> to vector<4x256xf32>
    %c16 = arith.constant 16 : index
    %c0_41 = arith.constant 0 : index
    %126 = vector.load %arg19[%c16, %c0_41] : memref<144x256xf32, #tpu.memory_space<vmem>>, vector<4x256xf32>
    tpu.vector_store %arg19[%c16, %c0_41], %125 {strides = array<i32>} : memref<144x256xf32, #tpu.memory_space<vmem>>, vector<4x256xf32>,
    %127 = vector.extract_strided_slice %110 {offsets = [0, 129], sizes = [4, 256], strides = [1, 1]} : vector<4x512xf32> to vector<4x256xf32>
    %128 = vector.broadcast %2 : vector<1x256xf32> to vector<4x256xf32>
    %129 = arith.mulf %127, %128 : vector<4x256xf32>
    %c20 = arith.constant 20 : index
    %c0_42 = arith.constant 0 : index
    %130 = vector.load %arg19[%c20, %c0_42] : memref<144x256xf32, #tpu.memory_space<vmem>>, vector<4x256xf32>
    tpu.vector_store %arg19[%c20, %c0_42], %129 {strides = array<i32>} : memref<144x256xf32, #tpu.memory_space<vmem>>, vector<4x256xf32>,
    %131 = vector.extract_strided_slice %110 {offsets = [0, 143], sizes = [4, 256], strides = [1, 1]} : vector<4x512xf32> to vector<4x256xf32>
    %132 = vector.broadcast %1 : vector<1x256xf32> to vector<4x256xf32>
    %133 = arith.mulf %131, %132 : vector<4x256xf32>
    %c24 = arith.constant 24 : index
    %c0_43 = arith.constant 0 : index
    %134 = vector.load %arg19[%c24, %c0_43] : memref<144x256xf32, #tpu.memory_space<vmem>>, vector<4x256xf32>
    tpu.vector_store %arg19[%c24, %c0_43], %133 {strides = array<i32>} : memref<144x256xf32, #tpu.memory_space<vmem>>, vector<4x256xf32>,
    %135 = vector.extract_strided_slice %110 {offsets = [0, 144], sizes = [4, 256], strides = [1, 1]} : vector<4x512xf32> to vector<4x256xf32>
    %c28 = arith.constant 28 : index
    %c0_44 = arith.constant 0 : index
    %136 = vector.load %arg19[%c28, %c0_44] : memref<144x256xf32, #tpu.memory_space<vmem>>, vector<4x256xf32>
    tpu.vector_store %arg19[%c28, %c0_44], %135 {strides = array<i32>} : memref<144x256xf32, #tpu.memory_space<vmem>>, vector<4x256xf32>,
    %137 = vector.extract_strided_slice %110 {offsets = [0, 145], sizes = [4, 256], strides = [1, 1]} : vector<4x512xf32> to vector<4x256xf32>
    %138 = vector.broadcast %2 : vector<1x256xf32> to vector<4x256xf32>
    %139 = arith.mulf %137, %138 : vector<4x256xf32>
    %c32 = arith.constant 32 : index
    %c0_45 = arith.constant 0 : index
    %140 = vector.load %arg19[%c32, %c0_45] : memref<144x256xf32, #tpu.memory_space<vmem>>, vector<4x256xf32>
    tpu.vector_store %arg19[%c32, %c0_45], %139 {strides = array<i32>} : memref<144x256xf32, #tpu.memory_space<vmem>>, vector<4x256xf32>,
    %c0_46 = arith.constant 0 : index
    %c0_47 = arith.constant 0 : index
    %141 = vector.load %arg8[%c0_46, %c0_47] : memref<16x36xbf16, #tpu.memory_space<vmem>>, vector<16x36xbf16>
    %c0_48 = arith.constant 0 : index
    %c0_49 = arith.constant 0 : index
    %142 = vector.load %arg19[%c0_48, %c0_49] : memref<144x256xf32, #tpu.memory_space<vmem>>, vector<36x256xf32>
    %143 = arith.truncf %142 : vector<36x256xf32> to vector<36x256xbf16>
    %cst_50 = arith.constant dense<0.000000e+00> : vector<16x256xf32>
    %144 = tpu.matmul %141, %143, %cst_50 {dimension_numbers = #tpu.dot_dimension_numbers<[1], [0], [0], [1], [0, 0, 1, 1], [], []>} : vector<16x36xbf16>, vector<36x256xbf16>, vector<16x256xf32> -> vector<16x256xf32>
    %c0_51 = arith.constant 0 : index
    %c0_52 = arith.constant 0 : index
    %145 = vector.load %arg9[%c0_51, %c0_52] : memref<16x1xf32, #tpu.memory_space<vmem>>, vector<16x1xf32>
    %146 = vector.broadcast %145 : vector<16x1xf32> to vector<16x256xf32>
    %147 = arith.addf %144, %146 : vector<16x256xf32>
    %cst_53 = arith.constant 5.000000e-01 : f32
    %148 = vector.broadcast %cst_53 : f32 to vector<16x256xf32>
    %149 = arith.mulf %148, %147 : vector<16x256xf32>
    %cst_54 = arith.constant 0.707106769 : f32
    %150 = vector.broadcast %cst_54 : f32 to vector<16x256xf32>
    %151 = arith.mulf %147, %150 : vector<16x256xf32>
    %cst_55 = arith.constant 0.000000e+00 : f32
    %152 = vector.broadcast %cst_55 : f32 to vector<16x256xf32>
    %153 = arith.cmpf oge, %151, %152 : vector<16x256xf32>
    %cst_56 = arith.constant 1.000000e+00 : f32
    %cst_57 = arith.constant -1.000000e+00 : f32
    %154 = vector.broadcast %cst_56 : f32 to vector<16x256xf32>
    %155 = vector.broadcast %cst_57 : f32 to vector<16x256xf32>
    %156 = arith.select %153, %154, %155 : vector<16x256xi1>, vector<16x256xf32>
    %157 = math.absf %151 : vector<16x256xf32>
    %cst_58 = arith.constant 0.327591091 : f32
    %158 = vector.broadcast %cst_58 : f32 to vector<16x256xf32>
    %159 = arith.mulf %158, %157 : vector<16x256xf32>
    %cst_59 = arith.constant 1.000000e+00 : f32
    %160 = vector.broadcast %cst_59 : f32 to vector<16x256xf32>
    %161 = arith.addf %160, %159 : vector<16x256xf32>
    %cst_60 = arith.constant 1.000000e+00 : f32
    %162 = vector.broadcast %cst_60 : f32 to vector<16x256xf32>
    %163 = arith.divf %162, %161 : vector<16x256xf32>
    %cst_61 = arith.constant 1.06140542 : f32
    %164 = vector.broadcast %cst_61 : f32 to vector<16x256xf32>
    %165 = arith.mulf %164, %163 : vector<16x256xf32>
    %cst_62 = arith.constant -1.45315206 : f32
    %166 = vector.broadcast %cst_62 : f32 to vector<16x256xf32>
    %167 = arith.addf %165, %166 : vector<16x256xf32>
    %168 = arith.mulf %167, %163 : vector<16x256xf32>
    %cst_63 = arith.constant 1.42141378 : f32
    %169 = vector.broadcast %cst_63 : f32 to vector<16x256xf32>
    %170 = arith.addf %168, %169 : vector<16x256xf32>
    %171 = arith.mulf %170, %163 : vector<16x256xf32>
    %cst_64 = arith.constant -0.284496725 : f32
    %172 = vector.broadcast %cst_64 : f32 to vector<16x256xf32>
    %173 = arith.addf %171, %172 : vector<16x256xf32>
    %174 = arith.mulf %173, %163 : vector<16x256xf32>
    %cst_65 = arith.constant 0.254829586 : f32
    %175 = vector.broadcast %cst_65 : f32 to vector<16x256xf32>
    %176 = arith.addf %174, %175 : vector<16x256xf32>
    %177 = arith.mulf %176, %163 : vector<16x256xf32>
    %cst_66 = arith.constant 0.000000e+00 : f32
    %178 = vector.broadcast %cst_66 : f32 to vector<16x256xf32>
    %179 = arith.subf %178, %157 : vector<16x256xf32>
    %180 = arith.mulf %179, %157 : vector<16x256xf32>
    %181 = math.exp %180 : vector<16x256xf32>
    %182 = arith.mulf %177, %181 : vector<16x256xf32>
    %cst_67 = arith.constant 1.000000e+00 : f32
    %183 = vector.broadcast %cst_67 : f32 to vector<16x256xf32>
    %184 = arith.subf %183, %182 : vector<16x256xf32>
    %185 = arith.mulf %156, %184 : vector<16x256xf32>
    %cst_68 = arith.constant 1.000000e+00 : f32
    %186 = vector.broadcast %cst_68 : f32 to vector<16x256xf32>
    %187 = arith.addf %186, %185 : vector<16x256xf32>
    %188 = arith.mulf %149, %187 : vector<16x256xf32>
    %c0_69 = arith.constant 0 : index
    %c0_70 = arith.constant 0 : index
    %189 = vector.load %arg10[%c0_69, %c0_70] : memref<16x1xf32, #tpu.memory_space<vmem>>, vector<16x1xf32>
    %c0_71 = arith.constant 0 : index
    %c0_72 = arith.constant 0 : index
    %190 = vector.load %arg11[%c0_71, %c0_72] : memref<16x1xf32, #tpu.memory_space<vmem>>, vector<16x1xf32>
    %191 = vector.shape_cast %188 : vector<16x256xf32> to vector<1x16x256xf32>
    %cst_73 = arith.constant dense<0.000000e+00> : vector<1xf32>
    %192 = vector.multi_reduction <add>, %191, %cst_73 [1, 2] : vector<1x16x256xf32> to vector<1xf32>
    %193 = vector.shape_cast %192 : vector<1xf32> to vector<1x1x1xf32>
    %194 = vector.extract %193[0, 0, 0] : f32 from vector<1x1x1xf32>
    %195 = vector.broadcast %194 : f32 to vector<1x1xf32>
    %196 = arith.mulf %188, %188 : vector<16x256xf32>
    %197 = vector.shape_cast %196 : vector<16x256xf32> to vector<1x16x256xf32>
    %cst_74 = arith.constant dense<0.000000e+00> : vector<1xf32>
    %198 = vector.multi_reduction <add>, %197, %cst_74 [1, 2] : vector<1x16x256xf32> to vector<1xf32>
    %199 = vector.shape_cast %198 : vector<1xf32> to vector<1x1x1xf32>
    %200 = vector.extract %199[0, 0, 0] : f32 from vector<1x1x1xf32>
    %201 = vector.broadcast %200 : f32 to vector<1x1xf32>
    %cst_75 = arith.constant 2.44140625E-4 : f32
    %202 = vector.broadcast %cst_75 : f32 to vector<1x1xf32>
    %203 = arith.mulf %195, %202 : vector<1x1xf32>
    %cst_76 = arith.constant 2.44140625E-4 : f32
    %204 = vector.broadcast %cst_76 : f32 to vector<1x1xf32>
    %205 = arith.mulf %201, %204 : vector<1x1xf32>
    %206 = arith.mulf %203, %203 : vector<1x1xf32>
    %207 = arith.subf %205, %206 : vector<1x1xf32>
    %208 = vector.broadcast %203 : vector<1x1xf32> to vector<16x256xf32>
    %209 = arith.subf %188, %208 : vector<16x256xf32>
    %cst_77 = arith.constant 9.99999974E-6 : f32
    %210 = vector.broadcast %cst_77 : f32 to vector<1x1xf32>
    %211 = arith.addf %207, %210 : vector<1x1xf32>
    %212 = math.rsqrt %211 : vector<1x1xf32>
    %213 = vector.broadcast %212 : vector<1x1xf32> to vector<16x256xf32>
    %214 = arith.mulf %209, %213 : vector<16x256xf32>
    %215 = vector.broadcast %189 : vector<16x1xf32> to vector<16x256xf32>
    %216 = arith.mulf %214, %215 : vector<16x256xf32>
    %217 = vector.broadcast %190 : vector<16x1xf32> to vector<16x256xf32>
    %218 = arith.addf %216, %217 : vector<16x256xf32>
    %c0_78 = arith.constant 0 : index
    %c128_79 = arith.constant 128 : index
    %219 = vector.load %arg18[%c0_78, %c128_79] : memref<16x512xf32, #tpu.memory_space<vmem>>, vector<16x256xf32>
    tpu.vector_store %arg18[%c0_78, %c128_79], %218 {strides = array<i32>} : memref<16x512xf32, #tpu.memory_space<vmem>>, vector<16x256xf32>,
    %c0_80 = arith.constant 0 : index
    %c0_81 = arith.constant 0 : index
    %220 = vector.load %arg18[%c0_80, %c0_81] : memref<16x512xf32, #tpu.memory_space<vmem>>, vector<16x512xf32>
    %221 = vector.extract_strided_slice %220 {offsets = [0, 111], sizes = [16, 256], strides = [1, 1]} : vector<16x512xf32> to vector<16x256xf32>
    %222 = vector.broadcast %1 : vector<1x256xf32> to vector<16x256xf32>
    %223 = arith.mulf %221, %222 : vector<16x256xf32>
    %c0_82 = arith.constant 0 : index
    %c0_83 = arith.constant 0 : index
    %224 = vector.load %arg19[%c0_82, %c0_83] : memref<144x256xf32, #tpu.memory_space<vmem>>, vector<16x256xf32>
    tpu.vector_store %arg19[%c0_82, %c0_83], %223 {strides = array<i32>} : memref<144x256xf32, #tpu.memory_space<vmem>>, vector<16x256xf32>,
    %225 = vector.extract_strided_slice %220 {offsets = [0, 112], sizes = [16, 256], strides = [1, 1]} : vector<16x512xf32> to vector<16x256xf32>
    %c16_84 = arith.constant 16 : index
    %c0_85 = arith.constant 0 : index
    %226 = vector.load %arg19[%c16_84, %c0_85] : memref<144x256xf32, #tpu.memory_space<vmem>>, vector<16x256xf32>
    tpu.vector_store %arg19[%c16_84, %c0_85], %225 {strides = array<i32>} : memref<144x256xf32, #tpu.memory_space<vmem>>, vector<16x256xf32>,
    %227 = vector.extract_strided_slice %220 {offsets = [0, 113], sizes = [16, 256], strides = [1, 1]} : vector<16x512xf32> to vector<16x256xf32>
    %228 = vector.broadcast %2 : vector<1x256xf32> to vector<16x256xf32>
    %229 = arith.mulf %227, %228 : vector<16x256xf32>
    %c32_86 = arith.constant 32 : index
    %c0_87 = arith.constant 0 : index
    %230 = vector.load %arg19[%c32_86, %c0_87] : memref<144x256xf32, #tpu.memory_space<vmem>>, vector<16x256xf32>
    tpu.vector_store %arg19[%c32_86, %c0_87], %229 {strides = array<i32>} : memref<144x256xf32, #tpu.memory_space<vmem>>, vector<16x256xf32>,
    %231 = vector.extract_strided_slice %220 {offsets = [0, 127], sizes = [16, 256], strides = [1, 1]} : vector<16x512xf32> to vector<16x256xf32>
    %232 = vector.broadcast %1 : vector<1x256xf32> to vector<16x256xf32>
    %233 = arith.mulf %231, %232 : vector<16x256xf32>
    %c48 = arith.constant 48 : index
    %c0_88 = arith.constant 0 : index
    %234 = vector.load %arg19[%c48, %c0_88] : memref<144x256xf32, #tpu.memory_space<vmem>>, vector<16x256xf32>
    tpu.vector_store %arg19[%c48, %c0_88], %233 {strides = array<i32>} : memref<144x256xf32, #tpu.memory_space<vmem>>, vector<16x256xf32>,
    %235 = vector.extract_strided_slice %220 {offsets = [0, 128], sizes = [16, 256], strides = [1, 1]} : vector<16x512xf32> to vector<16x256xf32>
    %c64 = arith.constant 64 : index
    %c0_89 = arith.constant 0 : index
    %236 = vector.load %arg19[%c64, %c0_89] : memref<144x256xf32, #tpu.memory_space<vmem>>, vector<16x256xf32>
    tpu.vector_store %arg19[%c64, %c0_89], %235 {strides = array<i32>} : memref<144x256xf32, #tpu.memory_space<vmem>>, vector<16x256xf32>,
    %237 = vector.extract_strided_slice %220 {offsets = [0, 129], sizes = [16, 256], strides = [1, 1]} : vector<16x512xf32> to vector<16x256xf32>
    %238 = vector.broadcast %2 : vector<1x256xf32> to vector<16x256xf32>
    %239 = arith.mulf %237, %238 : vector<16x256xf32>
    %c80 = arith.constant 80 : index
    %c0_90 = arith.constant 0 : index
    %240 = vector.load %arg19[%c80, %c0_90] : memref<144x256xf32, #tpu.memory_space<vmem>>, vector<16x256xf32>
    tpu.vector_store %arg19[%c80, %c0_90], %239 {strides = array<i32>} : memref<144x256xf32, #tpu.memory_space<vmem>>, vector<16x256xf32>,
    %241 = vector.extract_strided_slice %220 {offsets = [0, 143], sizes = [16, 256], strides = [1, 1]} : vector<16x512xf32> to vector<16x256xf32>
    %242 = vector.broadcast %1 : vector<1x256xf32> to vector<16x256xf32>
    %243 = arith.mulf %241, %242 : vector<16x256xf32>
    %c96 = arith.constant 96 : index
    %c0_91 = arith.constant 0 : index
    %244 = vector.load %arg19[%c96, %c0_91] : memref<144x256xf32, #tpu.memory_space<vmem>>, vector<16x256xf32>
    tpu.vector_store %arg19[%c96, %c0_91], %243 {strides = array<i32>} : memref<144x256xf32, #tpu.memory_space<vmem>>, vector<16x256xf32>,
    %245 = vector.extract_strided_slice %220 {offsets = [0, 144], sizes = [16, 256], strides = [1, 1]} : vector<16x512xf32> to vector<16x256xf32>
    %c112 = arith.constant 112 : index
    %c0_92 = arith.constant 0 : index
    %246 = vector.load %arg19[%c112, %c0_92] : memref<144x256xf32, #tpu.memory_space<vmem>>, vector<16x256xf32>
    tpu.vector_store %arg19[%c112, %c0_92], %245 {strides = array<i32>} : memref<144x256xf32, #tpu.memory_space<vmem>>, vector<16x256xf32>,
    %247 = vector.extract_strided_slice %220 {offsets = [0, 145], sizes = [16, 256], strides = [1, 1]} : vector<16x512xf32> to vector<16x256xf32>
    %248 = vector.broadcast %2 : vector<1x256xf32> to vector<16x256xf32>
    %249 = arith.mulf %247, %248 : vector<16x256xf32>
    %c128_93 = arith.constant 128 : index
    %c0_94 = arith.constant 0 : index
    %250 = vector.load %arg19[%c128_93, %c0_94] : memref<144x256xf32, #tpu.memory_space<vmem>>, vector<16x256xf32>
    tpu.vector_store %arg19[%c128_93, %c0_94], %249 {strides = array<i32>} : memref<144x256xf32, #tpu.memory_space<vmem>>, vector<16x256xf32>,
    %c0_95 = arith.constant 0 : index
    %c0_96 = arith.constant 0 : index
    %251 = vector.load %arg12[%c0_95, %c0_96] : memref<8x144xbf16, #tpu.memory_space<vmem>>, vector<8x144xbf16>
    %c0_97 = arith.constant 0 : index
    %c0_98 = arith.constant 0 : index
    %252 = vector.load %arg19[%c0_97, %c0_98] : memref<144x256xf32, #tpu.memory_space<vmem>>, vector<144x256xf32>
    %253 = arith.truncf %252 : vector<144x256xf32> to vector<144x256xbf16>
    %cst_99 = arith.constant dense<0.000000e+00> : vector<8x256xf32>
    %254 = tpu.matmul %251, %253, %cst_99 {dimension_numbers = #tpu.dot_dimension_numbers<[1], [0], [0], [1], [0, 0, 1, 1], [], []>} : vector<8x144xbf16>, vector<144x256xbf16>, vector<8x256xf32> -> vector<8x256xf32>
    %c0_100 = arith.constant 0 : index
    %c0_101 = arith.constant 0 : index
    %255 = vector.load %arg13[%c0_100, %c0_101] : memref<8x1xf32, #tpu.memory_space<vmem>>, vector<8x1xf32>
    %256 = vector.broadcast %255 : vector<8x1xf32> to vector<8x256xf32>
    %257 = arith.addf %254, %256 : vector<8x256xf32>
    %c0_102 = arith.constant 0 : index
    %c0_103 = arith.constant 0 : index
    %258 = vector.load %arg14[%c0_102, %c0_103] : memref<8x4xbf16, #tpu.memory_space<vmem>>, vector<8x4xbf16>
    %259 = arith.truncf %10 : vector<4x256xf32> to vector<4x256xbf16>
    %cst_104 = arith.constant dense<0.000000e+00> : vector<8x256xf32>
    %260 = tpu.matmul %258, %259, %cst_104 {dimension_numbers = #tpu.dot_dimension_numbers<[1], [0], [0], [1], [0, 0, 1, 1], [], []>} : vector<8x4xbf16>, vector<4x256xbf16>, vector<8x256xf32> -> vector<8x256xf32>
    %c0_105 = arith.constant 0 : index
    %c0_106 = arith.constant 0 : index
    %261 = vector.load %arg15[%c0_105, %c0_106] : memref<8x1xf32, #tpu.memory_space<vmem>>, vector<8x1xf32>
    %262 = vector.broadcast %261 : vector<8x1xf32> to vector<8x256xf32>
    %263 = arith.addf %260, %262 : vector<8x256xf32>
    %264 = arith.addf %257, %263 : vector<8x256xf32>
    %c0_107 = arith.constant 0 : index
    %c0_108 = arith.constant 0 : index
    %c0_109 = arith.constant 0 : index
    %265 = vector.load %arg16[%c0_107, %c0_108, %c0_109] : memref<1x8x256xf32, #tpu.memory_space<vmem>>, vector<1x8x256xf32>
    %266 = vector.shape_cast %265 : vector<1x8x256xf32> to vector<8x256xf32>
    %267 = vector.shape_cast %264 : vector<8x256xf32> to vector<1x8x256xf32>
    tpu.vector_store %arg16[%c0_107, %c0_108, %c0_109], %267 {strides = array<i32>} : memref<1x8x256xf32, #tpu.memory_space<vmem>>, vector<1x8x256xf32>,
    return
  }
  func.func @transform_0(%arg0: i32) -> (i32, i32, i32) {
    %c0_i32 = arith.constant 0 : i32
    %c0_i32_0 = arith.constant 0 : i32
    %c0_i32_1 = arith.constant 0 : i32
    return %arg0, %c0_i32, %c0_i32_0 : i32, i32, i32
  }
  func.func @transform_1(%arg0: i32) -> (i32, i32, i32) {
    %c0_i32 = arith.constant 0 : i32
    %c0_i32_0 = arith.constant 0 : i32
    %c0_i32_1 = arith.constant 0 : i32
    return %arg0, %c0_i32, %c0_i32_0 : i32, i32, i32
  }
  func.func @transform_2(%arg0: i32) -> (i32, i32) {
    %c0_i32 = arith.constant 0 : i32
    %c0_i32_0 = arith.constant 0 : i32
    %c0_i32_1 = arith.constant 0 : i32
    return %c0_i32, %c0_i32_0 : i32, i32
  }
  func.func @transform_3(%arg0: i32) -> (i32, i32) {
    %c0_i32 = arith.constant 0 : i32
    %c0_i32_0 = arith.constant 0 : i32
    %c0_i32_1 = arith.constant 0 : i32
    return %c0_i32, %c0_i32_0 : i32, i32
  }
  func.func @transform_4(%arg0: i32) -> (i32, i32) {
    %c0_i32 = arith.constant 0 : i32
    %c0_i32_0 = arith.constant 0 : i32
    %c0_i32_1 = arith.constant 0 : i32
    return %c0_i32, %c0_i32_0 : i32, i32
  }
  func.func @transform_5(%arg0: i32) -> (i32, i32) {
    %c0_i32 = arith.constant 0 : i32
    %c0_i32_0 = arith.constant 0 : i32
    %c0_i32_1 = arith.constant 0 : i32
    return %c0_i32, %c0_i32_0 : i32, i32
  }
  func.func @transform_6(%arg0: i32) -> (i32, i32) {
    %c0_i32 = arith.constant 0 : i32
    %c0_i32_0 = arith.constant 0 : i32
    %c0_i32_1 = arith.constant 0 : i32
    return %c0_i32, %c0_i32_0 : i32, i32
  }
  func.func @transform_7(%arg0: i32) -> (i32, i32) {
    %c0_i32 = arith.constant 0 : i32
    %c0_i32_0 = arith.constant 0 : i32
    %c0_i32_1 = arith.constant 0 : i32
    return %c0_i32, %c0_i32_0 : i32, i32
  }
  func.func @transform_8(%arg0: i32) -> (i32, i32) {
    %c0_i32 = arith.constant 0 : i32
    %c0_i32_0 = arith.constant 0 : i32
    %c0_i32_1 = arith.constant 0 : i32
    return %c0_i32, %c0_i32_0 : i32, i32
  }
  func.func @transform_9(%arg0: i32) -> (i32, i32) {
    %c0_i32 = arith.constant 0 : i32
    %c0_i32_0 = arith.constant 0 : i32
    %c0_i32_1 = arith.constant 0 : i32
    return %c0_i32, %c0_i32_0 : i32, i32
  }
  func.func @transform_10(%arg0: i32) -> (i32, i32) {
    %c0_i32 = arith.constant 0 : i32
    %c0_i32_0 = arith.constant 0 : i32
    %c0_i32_1 = arith.constant 0 : i32
    return %c0_i32, %c0_i32_0 : i32, i32
  }
  func.func @transform_11(%arg0: i32) -> (i32, i32) {
    %c0_i32 = arith.constant 0 : i32
    %c0_i32_0 = arith.constant 0 : i32
    %c0_i32_1 = arith.constant 0 : i32
    return %c0_i32, %c0_i32_0 : i32, i32
  }
  func.func @transform_12(%arg0: i32) -> (i32, i32) {
    %c0_i32 = arith.constant 0 : i32
    %c0_i32_0 = arith.constant 0 : i32
    %c0_i32_1 = arith.constant 0 : i32
    return %c0_i32, %c0_i32_0 : i32, i32
  }
  func.func @transform_13(%arg0: i32) -> (i32, i32) {
    %c0_i32 = arith.constant 0 : i32
    %c0_i32_0 = arith.constant 0 : i32
    %c0_i32_1 = arith.constant 0 : i32
    return %c0_i32, %c0_i32_0 : i32, i32
  }
  func.func @transform_14(%arg0: i32) -> (i32, i32) {
    %c0_i32 = arith.constant 0 : i32
    %c0_i32_0 = arith.constant 0 : i32
    %c0_i32_1 = arith.constant 0 : i32
    return %c0_i32, %c0_i32_0 : i32, i32
  }
  func.func @transform_15(%arg0: i32) -> (i32, i32, i32) {
    %c0_i32 = arith.constant 0 : i32
    %c0_i32_0 = arith.constant 0 : i32
    %c0_i32_1 = arith.constant 0 : i32
    return %arg0, %c0_i32, %c0_i32_0 : i32, i32, i32
  }
}

</mosaic_0001>

<bundles_post_ra>
// kernel: tpu_custom_call.1
= control target key start
LH: loop header
LB: loop body
LE: loop exit
PB: predicated region body
PF: predicated region fallthrough
CT: control target
= control target key end

     0   :  { %s2988_s0 = inlined_call_operand.vmem [shape: f32[2,4,256], index: 0, kind: input, shape index: {}]   ;;  %s2989_s1 = inlined_call_operand.vmem [shape: f32[2,4,1], index: 1, kind: input, shape index: {}]   ;;  %s2990_s2 = inlined_call_operand.vmem [shape: f32[2,256], index: 2, kind: input, shape index: {}]   ;;  %s2991_s3 = inlined_call_operand.vmem [shape: f32[4,9], index: 3, kind: input, shape index: {}]   ;;  %s2992_s4 = inlined_call_operand.vmem [shape: f32[4,1], index: 4, kind: input, shape index: {}]   ;;  %s2993_s5 = inlined_call_operand.vmem [shape: f32[4,1], index: 5, kind: input, shape index: {}]   ;;  %s2994_s6 = inlined_call_operand.vmem [shape: f32[4,1], index: 6, kind: input, shape index: {}]   ;;  %s2995_s7 = inlined_call_operand.vmem [shape: bf16[16,36], index: 7, kind: input, shape index: {}]   ;;  %s2996_s8 = inlined_call_operand.vmem [shape: f32[16,1], index: 8, kind: input, shape index: {}]   ;;  %s2997_s9 = inlined_call_operand.vmem [shape: f32[16,1], index: 9, kind: input, shape index: {}]   ;;  %s2998_s10 = inlined_call_operand.vmem [shape: f32[16,1], index: 10, kind: input, shape index: {}]   ;;  %s2999_s11 = inlined_call_operand.vmem [shape: bf16[8,144], index: 11, kind: input, shape index: {}]   ;;  %s3000_s12 = inlined_call_operand.vmem [shape: f32[8,1], index: 12, kind: input, shape index: {}]   ;;  %s3001_s13 = inlined_call_operand.vmem [shape: bf16[8,4], index: 13, kind: input, shape index: {}]   ;;  %s3002_s14 = inlined_call_operand.vmem [shape: f32[8,1], index: 14, kind: input, shape index: {}]   ;;  %s3003_s15 = inlined_call_operand.hbm [shape: f32[2,8,256], index: 15, kind: output, shape index: {}]  }
   0x1   :  { %3020 = sst [smem:[#allocation8_spill]] %s2988_s0 }
   0x2   :  { %3021 = sst [smem:[#allocation9_spill]] %s2989_s1 }
   0x3   :  { %3022 = sst [smem:[#allocation10_spill]] %s2990_s2 }
   0x4   :  { %3023 = sst [smem:[#allocation11_spill]] %s2991_s3 }
   0x5   :  { %3024 = sst [smem:[#allocation12_spill]] %s2992_s4 }
   0x6   :  { %3025 = sst [smem:[#allocation13_spill]] %s2993_s5 }
   0x7   :  { %20 = vsyncpa [#allocation6], 0 }
   0x8   :  { %22 = vsyncpa [#allocation6 + $0x1], 0  ;;  %s2299_s18 = smov 0   ;;  %s2301_s19 = smov 0  }
   0x9   :  { %s2303_s20 = smov 0   ;;  %s2305_s21 = smov 0  }
   0xa LB: > { %s2320_s22 = sadd.s32 4294967295, %s2195_s21   ;;  %s1989_s23 = sadd.s32 4294967294, %s2195_s21   ;;  %s2195_s21 = sphi %s2305_s21, %s3045_s21   ;;  %s2191_s20 = sphi %s2303_s20, %s3044_s20   ;;  %s2187_s19 = sphi %s2301_s19, %s3043_s19   ;;  %s2183_s18 = sphi %s2299_s18, %s3042_s18  }
   0xb   : > { %s2324_s24 = sadd.s32 1, %s2195_s21   ;;  %s360_s25 = sadd.s32 1, %s2191_s20 }
   0xc   : > { %s357_s26 = ssub.s32 %s2195_s21, %s2324_s24  ;;  %p370_p0 = scmp.ne.s32.totalorder %s2191_s20, %s2187_s19 }
   0xd   : > { %p358_p1 = scmp.eq.s32.totalorder %s357_s26, 0  ;;  %p371_p2 = scmp.eq.s32.totalorder %s2320_s22, 1 }
   0xe   : > { %p376_p3 = scmp.ne.s32.totalorder %s2187_s19, %s2183_s18  ;;  %p377_p4 = scmp.eq.s32.totalorder %s1989_s23, 1 }
   0xf   : > { %s2335_s27 = scalar_select %p358_p1, %s2191_s20, %s360_s25  }
  0x10   : > { %p2337_p5 = por %p371_p2, %p370_p0  ;;  %p2341_p6 = por %p377_p4, %p376_p3 }
  0x11   : > { %p1992_p7 = scmp.ge.s32.totalorder %s2195_s21, 1  ;;  %p449_p8 = scmp.lt.s32.totalorder %s2195_s21, 3 }
  0x13   : > { %p450_p9 = pnand %p1992_p7, %p449_p8 }
  0x14   : > { %s3028_s3 = sld [smem:[#allocation11_spill]] (!%p450_p9)  ;;  %v2197_v1 = vmov (!%p450_p9), 3   ;;  %v2198_v2 = vmov (!%p450_p9), 1   ;;  %v524_v3 = vlaneseq (!%p450_p9)  ;;  %p501_p10 = scmp.lt.s32.totalorder (!%p450_p9), %s2320_s22, 1  ;;  %v2199_v6 = vmov (!%p450_p9), 0.0  }
  0x15   : > { %453 = sbr.rel (%p450_p9) target bundleno = 1916 (0x77c), region = 80  ;;  %2088 = vset.pattern.permute.xlu1 (!%p450_p9), %v2197_v1  ;;  %2086 = vset.pattern.permute.xlu0 (!%p450_p9), %v2198_v2  ;;  %s3029_s2 = sld [smem:[#allocation10_spill]] (!%p450_p9)  ;;  %512 = vst [vmem:[#allocation2] sm:$0xf] (!%p450_p9), %v2199_v6  ;;  %513 = vst [vmem:[#allocation2 + $0xc] sm:$0xf] (!%p450_p9), %v2199_v6 }
  0x16   : > { %v2358_v5 = vshrl.u32 (!%p450_p9), %v524_v3, 7  ;;  %v2200_v7 = vmov (!%p450_p9), 0   ;;  %v2201_v12 = vmov (!%p450_p9), 4   ;;  %v2202_v13 = vmov (!%p450_p9), 2   ;;  %s3030_s0 = sld [smem:[#allocation8_spill]] (!%p450_p9)  ;;  %s3004_s23 = smov (!%p450_p9), 127  }
  0x17   : > { %1194 = vmatprep.mubr.bf16.mxu0 (!%p450_p9), %v2200_v7  ;;  %v2203_v23 = vmov (!%p450_p9), 5   ;;  %v2204_v25 = vmov (!%p450_p9), 6   ;;  %v2207_v28 = vmov (!%p450_p9), 7   ;;  %v2208_v30 = vmov (!%p450_p9), 8   ;;  %s3010_s30 = smov (!%p450_p9), 111   ;;  %s3008_s16 = smov (!%p450_p9), 112  }
  0x18   : > { %v526_v8 = vsub.s32 (!%p450_p9), 0, %v2358_v5  ;;  %v530_v9 = vsub.s32 (!%p450_p9), 2, %v2358_v5  ;;  %v601_v10 = vsub.s32 (!%p450_p9), 1, %v2358_v5  ;;  %v605_v11 = vsub.s32 (!%p450_p9), 3, %v2358_v5  ;;  %s3031_s4 = sld [smem:[#allocation12_spill]] (!%p450_p9)  ;;  %s3032_s1 = sld [smem:[#allocation9_spill]] (!%p450_p9) }
  0x19   : > { %v2211_v31 = vmov (!%p450_p9), 839922192   ;;  %vm593_vm0 = vcmask (!%p450_p9), 1039360   ;;  %vm623_vm1 = vcmask (!%p450_p9), 924672   ;;  %vm591_vm2 = vcmask (!%p450_p9), 1043456   ;;  %s3033_s5 = sld [smem:[#allocation13_spill]] (!%p450_p9) }
  0x1a   : > { %v2350_v0 = vld [vmem:[%s3028_s3] sm:$0xf] (!%p450_p9)  ;;  %v559_v32 = vunpack.c.l.s4 (!%p450_p9), %v2211_v31  ;;  %vm687_vm3 = vcmask (!%p450_p9), 916480   ;;  %vm548_vm4 = vcmask (!%p450_p9), 908288   ;;  %vm651_vm5 = vcmask (!%p450_p9), 1031168  }
  0x1b   : > { %666 = vperm.xlu1 (!%p450_p9), %2088, %v2350_v0   ;;  %571 = vperm.xlu0 (!%p450_p9), %2086, %v2350_v0   ;;  %v511_v4 = vld [vmem:[%s3029_s2] sm:$0xf] (!%p450_p9)  ;;  %vm886_vm6 = vcmask (!%p450_p9), 138240   ;;  %s3034_s2 = smov (!%p450_p9), 113   ;;  %vm1011_vm7 = vcmask (!%p450_p9), 130048   ;;  %vm1048_vm8 = vcmask (!%p450_p9), 7168  }
  0x1c   : > { %s2363_s25 = scalar_select %p501_p10, %s2320_s22, 1  ;;  %v527_v14 = vrot.slane %v511_v4, %v526_v8  ;;  %v531_v15 = vrot.slane %v511_v4, %v530_v9  ;;  %v602_v16 = vrot.slane %v511_v4, %v601_v10  ;;  %v606_v17 = vrot.slane %v511_v4, %v605_v11 }
  0x1d   : > { %v560_v33 = vunpack.c.0.s8 %v559_v32  ;;  %vm1029_vm9 = vcmask 121856   ;;  %vm1155_vm10 = vcmask 1041408   ;;  %vm1151_vm11 = vcmask 293888  }
  0x1e   : > { %s2010_s26 = sshll.u32 %s2363_s25, 3  ;;  %v2378_v19 = vrot.slane %v527_v14, %v526_v8  ;;  %v2380_v20 = vrot.slane %v531_v15, %v526_v8  ;;  %v2382_v21 = vrot.slane %v602_v16, %v601_v10  ;;  %v2385_v22 = vrot.slane %v606_v17, %v601_v10  ;;  %v845_v9 = vld [vmem:[%s3031_s4] sm:$0xf]  ;;  %s3039_s4 = smov 15  }
  0x1f   : > { %2089 = vset.pattern.permute.xlu1 %v2201_v12  ;;  %2087 = vset.pattern.permute.xlu0 %v2202_v13  ;;  %s505_s17 = scalar_lea.vmem %s3030_s0, %s2010_s26  ;;  %s3006_s26 = smov 113   ;;  %v2429_v34 = vsub.s32 %v560_v33, %v2358_v5 }
  0x20   : > { %694 = vperm.xlu1 %2089, %v2350_v0   ;;  %630 = vperm.xlu0 %2087, %v2350_v0   ;;  %v2376_v18 = vld [vmem:[%s505_s17] sm:$0xff]  ;;  %v2389_v24 = vcombine.low %v2378_v19, %v2380_v20  ;;  %v2394_v26 = vcombine.low %v2382_v21, %v2385_v22  ;;  %s2212_s17 = smov 126   ;;  %s3014_s0 = smov 17  }
  0x21   : > { %519 = vst [vmem:[#allocation2 + $0x4] sm:$0xff] %v2376_v18 }
  0x24   : > { %2090 = vset.pattern.permute.xlu1 %v2203_v23  ;;  %2091 = vset.pattern.permute.xlu0 %v2204_v25 }
  0x25   : > { %732 = vperm.xlu1 %2090, %v2350_v0   ;;  %657 = vrot.lane.b32.xlu0 %v2389_v24, %s3004_s23 }
  0x28   : > { %v2401_v27 = vld [vmem:[#allocation2] sm:$0xff]  ;;  %v2406_v29 = vld [vmem:[#allocation2 + $0x8] sm:$0xff] }
  0x29   : > { %620 = vrot.lane.b32.xlu1 %v2394_v26, %s3006_s26  ;;  %764 = vperm.xlu0 %2091, %v2350_v0   ;;  %v698_v59 = vrot.slane %v2401_v27, 4  ;;  %v699_v60 = vrot.slane %v2406_v29, 4 }
  0x2a   : > { %2095 = vset.pattern.permute.xlu1 %v2200_v7 }
  0x2b   : > { %v700_v3 = vsel %vm591_vm2, %v698_v59, %v699_v60 }
  0x2d   : > { %720 = vrot.lane.b32.xlu1 %v2401_v27, %s3004_s23  ;;  %2092 = vset.pattern.permute.xlu0 %v2207_v28 }
  0x2e   : > { %785 = vperm.xlu0 %2092, %v2350_v0  }
  0x31   : > { %722 = vrot.lane.b32.xlu1 %v2406_v29, %s3004_s23 }
  0x32   : > { %2093 = vset.pattern.permute.xlu0 %v2208_v30 }
  0x33   : > { %825 = vperm.xlu0 %2093, %v2350_v0  }
  0x35   : > { %752 = vrot.lane.b32.xlu1 %v2401_v27, %s3006_s26 }
  0x37   : > { %814 = vrot.lane.b32.xlu0 %v2401_v27, %s3010_s30 }
  0x38   : > { %2094 = vset.pattern.permute.xlu0 %v2200_v7 }
  0x39   : > { %754 = vrot.lane.b32.xlu1 %v2406_v29, %s3006_s26  ;;  %s1996_s26 = sshll.u32 %s2363_s25, 2  ;;  %s3035_s25 = smov 127  }
  0x3b   : > { %556 = vperm.xlu0 %2094, %v2350_v0  }
  0x3d   : > { %787 = vrot.lane.b32.xlu1 %v2401_v27, %s3008_s16 }
  0x41   : > { %789 = vrot.lane.b32.xlu1 %v2406_v29, %s3008_s16 }
  0x45   : > { %816 = vrot.lane.b32.xlu1 %v2406_v29, %s3010_s30 }
  0x49   : > { %545 = vrot.lane.b32.xlu1 %v2389_v24, %s3010_s30 }
  0x9a   : > { %v667_v35 = vpop.permute.xlu1 %666  ;;  %v572_v36 = vpop.permute.xlu0 %571 }
  0x9b   : > { %v579_v37 = vrot.slane %v572_v36, %v2429_v34  ;;  %v674_v58 = vrot.slane %v667_v35, %v2429_v34 }
  0x9d   : > { %v581_v38 = vmul.f32 %v579_v37, %v2401_v27  ;;  %v582_v39 = vmul.f32 %v579_v37, %v2406_v29 }
  0x9f   : > { %v695_v40 = vpop.permute.xlu1 %694  ;;  %v631_v41 = vpop.permute.xlu0 %630  ;;  %587 = vrot.lane.b32.xlu0 %v582_v39, %s3004_s23  ;;  %585 = vrot.lane.b32.xlu1 %v581_v38, %s3004_s23  ;;  %s3012_s23 = smov 16  }
  0xa0   : > { %v638_v46 = vrot.slane %v631_v41, %v2429_v34  ;;  %v708_v1 = vrot.slane %v695_v40, %v2429_v34 }
  0xa2   : > { %v710_v12 = vmul.f32 %v708_v1, %v700_v3 }
  0xa3   : > { %v658_v42 = vpop.permute.xlu0 %657 }
  0xa4   : > { %v733_v43 = vpop.permute.xlu1 %732  ;;  %v2436_v44 = vrot.slane %v658_v42, 4 }
  0xa5   : > { %v740_v13 = vrot.slane %v733_v43, %v2429_v34 }
  0xa6   : > { %v2443_v48 = vsel %vm593_vm0, %v2436_v44, %v658_v42  ;;  %v664_v54 = vmul.f32 %v2436_v44, %v2406_v29 }
  0xa7   : > { %v663_v55 = vmul.f32 %v2443_v48, %v2401_v27 }
  0xa8   : > { %v621_v45 = vpop.permute.xlu1 %620  ;;  %v765_v57 = vpop.permute.xlu0 %764  ;;  %v677_v0 = vmul.f32 %v674_v58, %v664_v54 }
  0xa9   : > { %v2439_v47 = vrot.slane %v621_v45, 4  ;;  %v676_v2 = vmul.f32 %v674_v58, %v663_v55 }
  0xab   : > { %v2447_v49 = vsel %vm623_vm1, %v2439_v47, %v621_v45  ;;  %v628_v50 = vmul.f32 %v2439_v47, %v2406_v29 }
  0xac   : > { %v627_v51 = vmul.f32 %v2447_v49, %v2401_v27  ;;  %v721_v52 = vpop.permute.xlu1 %720 }
  0xad   : > { %v641_v53 = vmul.f32 %v638_v46, %v628_v50  ;;  %v724_v62 = vrot.slane %v721_v52, 4  ;;  %v786_v10 = vpop.permute.xlu0 %785 }
  0xae   : > { %v640_v56 = vmul.f32 %v638_v46, %v627_v51  ;;  %v802_v37 = vrot.slane %v786_v10, %v2429_v34  ;;  %v772_v46 = vrot.slane %v765_v57, %v2429_v34 }
  0xaf   : > { %646 = vrot.lane.b32.xlu0 %v641_v53, %s2212_s17 }
  0xb0   : > { %v723_v61 = vpop.permute.xlu1 %722  ;;  %644 = vrot.lane.b32.xlu1 %v640_v56, %s2212_s17 }
  0xb1   : > { %v725_v63 = vrot.slane %v723_v61, 4 }
  0xb2   : > { %v826_v16 = vpop.permute.xlu0 %825 }
  0xb3   : > { %v726_v4 = vsel %vm591_vm2, %v724_v62, %v725_v63  ;;  %682 = vrot.lane.b32.xlu0 %v677_v0, %s3008_s16  ;;  %v833_v54 = vrot.slane %v826_v16, %v2429_v34 }
  0xb4   : > { %v727_v5 = vsel %vm593_vm0, %v726_v4, %v723_v61  ;;  %v753_v8 = vpop.permute.xlu1 %752  ;;  %680 = vrot.lane.b32.xlu1 %v676_v2, %s3008_s16  ;;  %s509_s16 = scalar_lea.vmem %s3032_s1, %s1996_s26  ;;  %s3018_s26 = smov 1  }
  0xb5   : > { %v730_v11 = vmul.f32 %v727_v5, %v2394_v26  ;;  %v860_v25 = vld [vmem:[%s509_s16] sm:$0xf]  ;;  %v756_v28 = vrot.slane %v753_v8, 4 }
  0xb6   : > { %v815_v32 = vpop.permute.xlu0 %814 }
  0xb7   : > { %848 = vperm.xlu0 %2094, %v845_v9   ;;  %v742_v15 = vmul.f32 %v740_v13, %v730_v11  ;;  %v818_v39 = vrot.slane %v815_v32, 4 }
  0xb8   : > { %v755_v14 = vpop.permute.xlu1 %754  ;;  %712 = vrot.lane.b32.xlu1 %v710_v12, %s3010_s30 }
  0xb9   : > { %v757_v17 = vrot.slane %v755_v14, 4 }
  0xba   : > { %v557_v56 = vpop.permute.xlu0 %556 }
  0xbb   : > { %744 = vrot.lane.b32.xlu0 %v742_v15, %s3010_s30  ;;  %v758_v30 = vsel %vm591_vm2, %v756_v28, %v757_v17  ;;  %v564_v4 = vrot.slane %v557_v56, %v2429_v34 }
  0xbc   : > { %v788_v23 = vpop.permute.xlu1 %787  ;;  %v759_v36 = vsel %vm623_vm1, %v758_v30, %v755_v14 }
  0xbd   : > { %v791_v33 = vrot.slane %v788_v23, 4  ;;  %v762_v42 = vmul.f32 %v759_v36, %v2389_v24 }
  0xbf   : > { %863 = vperm.xlu0 %2094, %v860_v25   ;;  %v774_v53 = vmul.f32 %v772_v46, %v762_v42 }
  0xc0   : > { %v790_v31 = vpop.permute.xlu1 %789 }
  0xc1   : > { %v792_v35 = vrot.slane %v790_v31, 4 }
  0xc3   : > { %v793_v38 = vsel %vm591_vm2, %v791_v33, %v792_v35 }
  0xc4   : > { %v794_v40 = vsel %vm687_vm3, %v793_v38, %v790_v31  ;;  %v817_v41 = vpop.permute.xlu1 %816 }
  0xc5   : > { %v819_v43 = vrot.slane %v817_v41, 4  ;;  %v804_v45 = vmul.f32 %v802_v37, %v794_v40 }
  0xc7   : > { %v820_v50 = vsel %vm591_vm2, %v818_v39, %v819_v43  ;;  %806 = vrot.lane.b32.xlu1 %v804_v45, %s3010_s30 }
  0xc8   : > { %v821_v51 = vsel %vm548_vm4, %v820_v50, %v817_v41  ;;  %v546_v58 = vpop.permute.xlu1 %545 }
  0xc9   : > { %v823_v52 = vmul.f32 %v821_v51, %v2394_v26  ;;  %v2491_v60 = vrot.slane %v546_v58, 4 }
  0xcb   : > { %776 = vrot.lane.b32.xlu1 %v774_v53, %s3010_s30  ;;  %v835_v55 = vmul.f32 %v833_v54, %v823_v52  ;;  %v2495_v63 = vsel %vm548_vm4, %v2491_v60, %v546_v58  ;;  %v553_v10 = vmul.f32 %v2491_v60, %v2406_v29 }
  0xcc   : > { %v552_v5 = vmul.f32 %v2495_v63, %v2401_v27 }
  0xcd   : > { %v567_v16 = vmul.f32 %v564_v4, %v553_v10 }
  0xce   : > { %v566_v14 = vmul.f32 %v564_v4, %v552_v5 }
  0xcf   : > { %837 = vrot.lane.b32.xlu1 %v835_v55, %s3010_s30 }
 0x111   : > { %v588_v59 = vpop.permute.xlu0 %587  ;;  %v586_v57 = vpop.permute.xlu1 %585 }
 0x112   : > { %v590_v0 = vrot.slane %v588_v59, 4  ;;  %v589_v1 = vrot.slane %v586_v57, 4  ;;  %v598_v30 = vadd.f32 %v588_v59, %v567_v16 }
 0x114   : > { %v592_v11 = vsel %vm591_vm2, %v589_v1, %v590_v0 }
 0x115   : > { %v594_v17 = vsel %vm593_vm0, %v586_v57, %v592_v11 }
 0x116   : > { %v597_v28 = vadd.f32 %v594_v17, %v566_v14 }
 0x121   : > { %v647_v61 = vpop.permute.xlu0 %646 }
 0x122   : > { %v645_v62 = vpop.permute.xlu1 %644  ;;  %v649_v8 = vrot.slane %v647_v61, 4  ;;  %v656_v35 = vadd.f32 %v647_v61, %v598_v30 }
 0x123   : > { %v648_v9 = vrot.slane %v645_v62, 4 }
 0x125   : > { %v683_v2 = vpop.permute.xlu0 %682  ;;  %v650_v15 = vsel %vm591_vm2, %v648_v9, %v649_v8 }
 0x126   : > { %v681_v3 = vpop.permute.xlu1 %680  ;;  %v685_v12 = vrot.slane %v683_v2, 4  ;;  %v652_v27 = vsel %vm651_vm5, %v645_v62, %v650_v15  ;;  %v692_v37 = vadd.f32 %v683_v2, %v656_v35 }
 0x127   : > { %v684_v13 = vrot.slane %v681_v3, 4  ;;  %v655_v32 = vadd.f32 %v652_v27, %v597_v28 }
 0x129   : > { %v686_v23 = vsel %vm591_vm2, %v684_v13, %v685_v12 }
 0x12a   : > { %v713_v25 = vpop.permute.xlu1 %712  ;;  %v688_v31 = vsel %vm687_vm3, %v681_v3, %v686_v23 }
 0x12b   : > { %v714_v29 = vrot.slane %v713_v25, 4  ;;  %v691_v36 = vadd.f32 %v688_v31, %v655_v32 }
 0x12d   : > { %v715_v38 = vsel %vm548_vm4, %v714_v29, %v713_v25  ;;  %v719_v41 = vadd.f32 %v714_v29, %v692_v37 }
 0x12e   : > { %v718_v43 = vadd.f32 %v715_v38, %v691_v36 }
 0x136   : > { %v849_v33 = vpop.permute.xlu0 %848 }
 0x137   : > { %v856_v1 = vrot.slane %v849_v33, %v2429_v34 }
 0x139   : > { %v807_v39 = vpop.permute.xlu1 %806 }
 0x13a   : > { %v745_v40 = vpop.permute.xlu0 %744  ;;  %v808_v51 = vrot.slane %v807_v39, 4 }
 0x13b   : > { %v746_v42 = vrot.slane %v745_v40, 4 }
 0x13c   : > { %v809_v59 = vsel %vm548_vm4, %v808_v51, %v807_v39 }
 0x13d   : > { %v747_v45 = vsel %vm548_vm4, %v746_v42, %v745_v40  ;;  %v751_v46 = vadd.f32 %v746_v42, %v719_v41  ;;  %v777_v50 = vpop.permute.xlu1 %776  ;;  %v875_v40 = vld [vmem:[%s3033_s5] sm:$0xf]  ;;  %s3037_s5 = smov 111  }
 0x13e   : > { %v750_v52 = vadd.f32 %v747_v45, %v718_v43  ;;  %v778_v53 = vrot.slane %v777_v50, 4  ;;  %v864_v62 = vpop.permute.xlu0 %863  ;;  %v876_v41 = vld [vmem:[%s2994_s6] sm:$0xf] }
 0x13f   : > { %v871_v5 = vrot.slane %v864_v62, %v2429_v34 }
 0x140   : > { %v779_v54 = vsel %vm548_vm4, %v778_v53, %v777_v50  ;;  %v783_v55 = vadd.f32 %v778_v53, %v751_v46 }
 0x141   : > { %v782_v56 = vadd.f32 %v779_v54, %v750_v52  ;;  %v838_v58 = vpop.permute.xlu1 %837 }
 0x142   : > { %v813_v57 = vadd.f32 %v808_v51, %v783_v55  ;;  %v839_v61 = vrot.slane %v838_v58, 4 }
 0x143   : > { %v812_v0 = vadd.f32 %v809_v59, %v782_v56 }
 0x144   : > { %v840_v2 = vsel %vm548_vm4, %v839_v61, %v838_v58  ;;  %v844_v3 = vadd.f32 %v839_v61, %v813_v57 }
 0x145   : > { %v843_v4 = vadd.f32 %v840_v2, %v812_v0 }
 0x146   : > { %v859_v8 = vadd.f32 %v856_v1, %v844_v3 }
 0x147   : > { %v858_v9 = vadd.f32 %v856_v1, %v843_v4 }
 0x148   : > { %v2514_v10 = vadd.f32 %v871_v5, %v859_v8 }
 0x149   : > { %v2516_v11 = vadd.f32 %v871_v5, %v858_v9 }
 0x14a   : > { %884 = vrot.lane.b32.xlu0 %v2514_v10, %s3014_s0  ;;  %v905_v15 = vmul.f32 %v2514_v10, %v2514_v10 }
 0x14b   : > { %v879_v12 = vcombine.high %v2516_v11, %v2516_v11  ;;  %v904_v13 = vmul.f32 %v2516_v11, %v2516_v11 }
 0x14d   : > { %882 = vrot.lane.b32.xlu1 %v879_v12, %s3014_s0  ;;  %v908_v14 = vcombine.high %v904_v13, %v904_v13 }
 0x14e   : > { %880 = vrot.lane.b32.xlu0 %v2516_v11, %s3014_s0 }
 0x151   : > { %909 = vrot.lane.b32.xlu1 %v904_v13, %s3014_s0 }
 0x152   : > { %911 = vrot.lane.b32.xlu0 %v908_v14, %s3014_s0 }
 0x155   : > { %913 = vrot.lane.b32.xlu1 %v905_v15, %s3014_s0 }
 0x1bc   : > { %v885_v16 = vpop.permute.xlu0 %884 }
 0x1bf   : > { %v883_v17 = vpop.permute.xlu1 %882 }
 0x1c0   : > { %v881_v23 = vpop.permute.xlu0 %880  ;;  %v888_v25 = vsel %vm886_vm6, %v883_v17, %v885_v16 }
 0x1c1   : > { %v887_v27 = vsel %vm886_vm6, %v881_v23, %v883_v17  ;;  %v892_v28 = vsel %vm591_vm2, %v888_v25, 0.0 }
 0x1c2   : > { %v891_v30 = vsel %vm591_vm2, %v887_v27, 0.0 }
 0x1c3   : > { %v910_v31 = vpop.permute.xlu1 %909  ;;  %v893_v29 = vadd.f32 %v892_v28, %v891_v30 }
 0x1c4   : > { %v912_v32 = vpop.permute.xlu0 %911 }
 0x1c5   : > { %894 = vadd.xlane.f32.xlu0 %v893_v29  ;;  %v915_v33 = vsel %vm886_vm6, %v910_v31, %v912_v32 }
 0x1c6   : > { %v919_v37 = vsel %vm591_vm2, %v915_v33, 0.0 }
 0x1c7   : > { %v914_v35 = vpop.permute.xlu1 %913 }
 0x1c8   : > { %v916_v36 = vsel %vm886_vm6, %v912_v32, %v914_v35 }
 0x1c9   : > { %v920_v38 = vsel %vm591_vm2, %v916_v36, 0.0 }
 0x1ca   : > { %v921_v39 = vadd.f32 %v920_v38, %v919_v37 }
 0x1cc   : > { %922 = vadd.xlane.f32.xlu1 %v921_v39 }
 0x1db   : > { %944 = vperm.xlu0 %2094, %v875_v40  }
 0x1dd   : > { %958 = vperm.xlu1 %2095, %v876_v41  }
 0x252   : > { %v895_v42 = vpop.xlane.xlu0 %894 }
 0x253   : > { %v896_v43 = vrot.slane %v895_v42, 4 }
 0x255   : > { %v897_v45 = vadd.f32 %v896_v43, %v895_v42 }
 0x257   : > { %v898_v46 = vrot.slane %v897_v45, 2 }
 0x259   : > { %v923_v50 = vpop.xlane.xlu1 %922  ;;  %v899_v51 = vadd.f32 %v898_v46, %v897_v45 }
 0x25a   : > { %v924_v52 = vrot.slane %v923_v50, 4  ;;  %v945_v5 = vpop.permute.xlu0 %944 }
 0x25b   : > { %v900_v53 = vrot.slane %v899_v51, 1  ;;  %v952_v14 = vrot.slane %v945_v5, %v2429_v34 }
 0x25c   : > { %v925_v54 = vadd.f32 %v924_v52, %v923_v50 }
 0x25d   : > { %v901_v55 = vadd.f32 %v900_v53, %v899_v51  ;;  %v959_v8 = vpop.permute.xlu1 %958 }
 0x25e   : > { %v926_v56 = vrot.slane %v925_v54, 2  ;;  %v966_v17 = vrot.slane %v959_v8, %v2429_v34 }
 0x25f   : > { %2018 = vpush %v901_v55 }
 0x260   : > { %v927_v58 = vadd.f32 %v926_v56, %v925_v54 }
 0x262   : > { %v928_v59 = vrot.slane %v927_v58, 1 }
 0x264   : > { %v929_v57 = vadd.f32 %v928_v59, %v927_v58 }
 0x266   : > { %2020 = vpush %v929_v57 }
 0x290   : > { %s2019_s16 = spop %2018 }
 0x291   : > { %v903_v61 = vstv %s2019_s16  ;;  %s3016_s16 = smov 15  }
 0x292   : > { %v932_v62 = vmul.f32 0.0009765625, %v903_v61 }
 0x294   : > { %v934_v2 = vmul.f32 %v932_v62, %v932_v62  ;;  %v936_v9 = vsub.f32 %v2516_v11, %v932_v62  ;;  %v937_v12 = vsub.f32 %v2514_v10, %v932_v62 }
 0x297   : > { %s2021_s17 = spop %2020 }
 0x298   : > { %v931_v0 = vstv %s2021_s17  ;;  %s3036_s17 = smov 112  }
 0x299   : > { %v933_v1 = vmul.f32 0.0009765625, %v931_v0 }
 0x29b   : > { %v935_v3 = vsub.f32 %v933_v1, %v934_v2 }
 0x29d   : > { %v938_v4 = vadd.f32 1e-05, %v935_v3 }
 0x29f   : > { %2113 = vrsqrt.f32 %v938_v4 }
 0x2a9   : > { %v2114_v13 = vpop.eup %2113 }
 0x2aa   : > { %v940_v15 = vmul.f32 %v2114_v13, %v936_v9  ;;  %v941_v16 = vmul.f32 %v2114_v13, %v937_v12 }
 0x2ac   : > { %v954_v23 = vmul.f32 %v952_v14, %v940_v15  ;;  %v955_v25 = vmul.f32 %v952_v14, %v941_v16 }
 0x2ae   : > { %v968_v27 = vadd.f32 %v966_v17, %v954_v23  ;;  %v969_v28 = vadd.f32 %v966_v17, %v955_v25 }
 0x2b0   : > { %974 = vrot.lane.b32.xlu1 %v969_v28, %s3014_s0  ;;  %972 = vrot.lane.b32.xlu0 %v968_v27, %s3014_s0 }
 0x322   : > { %v975_v30 = vpop.permute.xlu1 %974  ;;  %v973_v31 = vpop.permute.xlu0 %972 }
 0x323   : > { %v977_v11 = vrot.slane %v975_v30, 4  ;;  %v976_v29 = vrot.slane %v973_v31, 4 }
 0x325   : > { %v978_v10 = vsel %vm591_vm2, %v976_v29, %v977_v11 }
 0x326   : > { %v979_v32 = vsel %vm886_vm6, %v973_v31, %v978_v10 }
 0x327   : > { %981 = vst [vmem:[#allocation2 + $0x4] sm:$0xff] %v979_v32 }
 0x32e   : > { %v983_v33 = vld [vmem:[#allocation2 + $0x8] sm:$0xff]  ;;  %v982_v35 = vld [vmem:[#allocation2] sm:$0xff] }
 0x32f   : > { %1076 = vrot.lane.b32.xlu1 %v983_v33, %s3034_s2  ;;  %1058 = vst [vmem:[#allocation4 + $0x28] sm:$0xf] %v983_v33  ;;  %1074 = vrot.lane.b32.xlu0 %v982_v35, %s3034_s2  ;;  %v1055_v34 = vcombine.high %v982_v35, %v982_v35  ;;  %v985_v36 = vmul.f32 %v983_v33, %v2491_v60 }
 0x330   : > { %v1004_v37 = vcombine.low %v983_v33, %v983_v33  ;;  %v1036_v38 = vmul.f32 %v982_v35, %v2443_v48  ;;  %v1019_v39 = vmul.f32 %v983_v33, %v2439_v47  ;;  %v984_v40 = vmul.f32 %v982_v35, %v2495_v63 }
 0x331   : > { %1057 = vst [vmem:[#allocation4 + $0x20] sm:$0xf] %v1055_v34  ;;  %v1003_v60 = vcombine.low %v982_v35, %v982_v35  ;;  %v1018_v41 = vmul.f32 %v982_v35, %v2447_v49  ;;  %v1037_v42 = vmul.f32 %v983_v33, %v2436_v44  ;;  %v1134_v44 = vld [vmem:[%s2996_s8] sm:$0xff]  ;;  %v1135_v49 = vld [vmem:[%s2996_s8 + $0x8] sm:$0xff] }
 0x332   : > { %v988_v43 = vcombine.high %v984_v40, %v984_v40  ;;  %v1040_v47 = vcombine.low %v1036_v38, %v1036_v38 }
 0x333   : > { %1061 = vrot.lane.b32.xlu1 %v983_v33, %s3035_s25  ;;  %1059 = vrot.lane.b32.xlu0 %v982_v35, %s3035_s25  ;;  %v1041_v48 = vcombine.low %v1037_v42, %v1037_v42  ;;  %v1022_v63 = vcombine.high %v1018_v41, %v1018_v41 }
 0x337   : > { %1103 = vrot.lane.b32.xlu1 %v983_v33, %s3010_s30  ;;  %1007 = vrot.lane.b32.xlu0 %v982_v35, %s3012_s23 }
 0x33b   : > { %993 = vrot.lane.b32.xlu1 %v985_v36, %s3014_s0  ;;  %1101 = vrot.lane.b32.xlu0 %v982_v35, %s3010_s30 }
 0x33f   : > { %1009 = vrot.lane.b32.xlu1 %v1004_v37, %s3012_s23  ;;  %1044 = vrot.lane.b32.xlu0 %v1036_v38, %s3018_s26 }
 0x343   : > { %1027 = vrot.lane.b32.xlu1 %v1019_v39, %s3016_s16  ;;  %989 = vrot.lane.b32.xlu0 %v984_v40, %s3014_s0 }
 0x347   : > { %1005 = vrot.lane.b32.xlu1 %v1003_v60, %s3012_s23  ;;  %1023 = vrot.lane.b32.xlu0 %v1018_v41, %s3016_s16 }
 0x34b   : > { %1046 = vrot.lane.b32.xlu1 %v1041_v48, %s3018_s26  ;;  %991 = vrot.lane.b32.xlu0 %v988_v43, %s3014_s0  ;;  %s3038_s0 = smov 1  }
 0x34f   : > { %1042 = vrot.lane.b32.xlu1 %v1040_v47, %s3018_s26  ;;  %1025 = vrot.lane.b32.xlu0 %v1022_v63, %s3016_s16  ;;  %s3040_s26 = smov 17   ;;  %s3041_s16 = smov 16  }
 0x353   : > { %1093 = vrot.lane.b32.xlu1 %v983_v33, %s3036_s17  ;;  %1091 = vrot.lane.b32.xlu0 %v1004_v37, %s3036_s17 }
 0x357   : > { %1138 = vperm.xlu1 %2095, %v1134_v44   ;;  %1089 = vrot.lane.b32.xlu0 %v982_v35, %s3036_s17 }
 0x35b   : > { %1143 = vperm.xlu0 %2094, %v1135_v49  }
 0x3a1   : > { %v1077_v45 = vpop.permute.xlu1 %1076  ;;  %v1075_v46 = vpop.permute.xlu0 %1074 }
 0x3a2   : > { %v1079_v50 = vrot.slane %v1077_v45, 4  ;;  %v1078_v51 = vrot.slane %v1075_v46, 4 }
 0x3a4   : > { %v1080_v52 = vsel %vm591_vm2, %v1078_v51, %v1079_v50 }
 0x3a5   : > { %v1081_v53 = vsel %vm623_vm1, %v1080_v52, %v1077_v45  ;;  %v1062_v54 = vpop.permute.xlu1 %1061  ;;  %v1060_v55 = vpop.permute.xlu0 %1059 }
 0x3a6   : > { %v1083_v56 = vmul.f32 %v1081_v53, %v2389_v24  ;;  %v1064_v58 = vrot.slane %v1062_v54, 4  ;;  %v1063_v59 = vrot.slane %v1060_v55, 4 }
 0x3a8   : > { %v1085_v57 = vcombine.high %v1083_v56, %v1083_v56  ;;  %1087 = vst [vmem:[#allocation4 + $0x30] sm:$0xf] %v1083_v56  ;;  %v1065_v61 = vsel %vm591_vm2, %v1063_v59, %v1064_v58  ;;  %v2109_v58 = vld [vmem:[%s2995_s7] sm:$0xff]  }
 0x3a9   : > { %v1066_v62 = vsel %vm593_vm0, %v1065_v61, %v1062_v54  ;;  %v1104_v0 = vpop.permute.xlu1 %1103  ;;  %v1008_v1 = vpop.permute.xlu0 %1007 }
 0x3aa   : > { %1088 = vst [vmem:[#allocation4 + $0x38] sm:$0xf] %v1085_v57  ;;  %v1068_v2 = vmul.f32 %v1066_v62, %v2394_v26  ;;  %v1106_v8 = vrot.slane %v1104_v0, 4 }
 0x3ac   : > { %v1070_v3 = vcombine.low %v1068_v2, %v1068_v2  ;;  %1073 = vst [vmem:[#allocation4 + $0x28] sm:$0xf0] %v1068_v2 }
 0x3ad   : > { %v994_v4 = vpop.permute.xlu1 %993  ;;  %v1102_v5 = vpop.permute.xlu0 %1101 }
 0x3ae   : > { %1072 = vst [vmem:[#allocation4 + $0x20] sm:$0xf0] %v1070_v3  ;;  %v1105_v24 = vrot.slane %v1102_v5, 4 }
 0x3b0   : > { %v1107_v9 = vsel %vm591_vm2, %v1105_v24, %v1106_v8  ;;  %vm1848_vm2 = vcmask 31744  }
 0x3b1   : > { %v1108_v12 = vsel %vm548_vm4, %v1107_v9, %v1104_v0  ;;  %v1010_v13 = vpop.permute.xlu1 %1009  ;;  %v1045_v14 = vpop.permute.xlu0 %1044 }
 0x3b2   : > { %v1110_v15 = vmul.f32 %v1108_v12, %v2394_v26  ;;  %v1013_v16 = vsel %vm1011_vm7, %v1008_v1, %v1010_v13 }
 0x3b3   : > { %1017 = vst [vmem:[#allocation4 + $0x8] sm:$0xf0] %v1013_v16  ;;  %v1123_v44 = vld [vmem:[#allocation4 + $0x28] sm:$0xff] }
 0x3b4   : > { %v1112_v17 = vcombine.high %v1110_v15, %v1110_v15  ;;  %1114 = vst [vmem:[#allocation4 + $0x40] sm:$0xf] %v1110_v15 }
 0x3b5   : > { %v1028_v23 = vpop.permute.xlu1 %1027  ;;  %v990_v25 = vpop.permute.xlu0 %989  ;;  %v1122_v51 = vld [vmem:[#allocation4 + $0x20] sm:$0xff] }
 0x3b6   : > { %1115 = vst [vmem:[#allocation4 + $0x48] sm:$0xf] %v1112_v17 }
 0x3b9   : > { %v1006_v27 = vpop.permute.xlu1 %1005  ;;  %v1024_v28 = vpop.permute.xlu0 %1023 }
 0x3ba   : > { %v1012_v30 = vsel %vm1011_vm7, %v1006_v27, %v1008_v1 }
 0x3bb   : > { %1016 = vst [vmem:[#allocation4] sm:$0xf0] %v1012_v30  ;;  %v1126_v50 = vld [vmem:[#allocation4 + $0x40] sm:$0xf] }
 0x3bc   : > { %v1132_v55 = vpack.c.bf16 %v1126_v50, %v1126_v50 }
 0x3bd   : > { %v1047_v31 = vpop.permute.xlu1 %1046  ;;  %v992_v11 = vpop.permute.xlu0 %991  ;;  %v1127_v46 = vld [vmem:[#allocation4 + $0x48] sm:$0xf] }
 0x3be   : > { %v1050_v29 = vsel %vm1048_vm8, %v1045_v14, %v1047_v31  ;;  %v995_v26 = vsel %vm886_vm6, %v990_v25, %v992_v11  ;;  %v996_v10 = vsel %vm886_vm6, %v992_v11, %v994_v4  ;;  %v1133_v54 = vpack.c.bf16 %v1127_v46, %v1127_v46 }
 0x3bf   : > { %1054 = vst [vmem:[#allocation4 + $0x18] sm:$0xf0] %v1050_v29  ;;  %999 = vst [vmem:[#allocation4] sm:$0xf] %v995_v26  ;;  %v1157_v56 = vsel %vm1155_vm10, %v1132_v55, 0 }
 0x3c0   : > { %1000 = vst [vmem:[#allocation4 + $0x8] sm:$0xf] %v996_v10 }
 0x3c1   : > { %v1043_v32 = vpop.permute.xlu1 %1042  ;;  %v1026_v33 = vpop.permute.xlu0 %1025 }
 0x3c2   : > { %v1049_v35 = vsel %vm1048_vm8, %v1043_v32, %v1045_v14  ;;  %v1030_v34 = vsel %vm1029_vm9, %v1024_v28, %v1026_v33  ;;  %v1031_v36 = vsel %vm1029_vm9, %v1026_v33, %v1028_v23 }
 0x3c3   : > { %1053 = vst [vmem:[#allocation4 + $0x10] sm:$0xf0] %v1049_v35  ;;  %1034 = vst [vmem:[#allocation4 + $0x10] sm:$0xf] %v1030_v34 }
 0x3c4   : > { %1035 = vst [vmem:[#allocation4 + $0x18] sm:$0xf] %v1031_v36 }
 0x3c5   : > { %v1094_v37 = vpop.permute.xlu1 %1093  ;;  %v1092_v38 = vpop.permute.xlu0 %1091 }
 0x3c6   : > { %v1096_v39 = vsel %vm687_vm3, %v1092_v38, %v1094_v37  ;;  %v1118_v48 = vld [vmem:[#allocation4] sm:$0xff] }
 0x3c7   : > { %1100 = vst [vmem:[#allocation4 + $0x38] sm:$0xf0] %v1096_v39  ;;  %v1119_v60 = vld [vmem:[#allocation4 + $0x8] sm:$0xff] }
 0x3c9   : > { %v1090_v40 = vpop.permute.xlu0 %1089 }
 0x3ca   : > { %v1095_v41 = vsel %vm687_vm3, %v1090_v40, %v1092_v38  ;;  %v1120_v43 = vld [vmem:[#allocation4 + $0x10] sm:$0xff] }
 0x3cb   : > { %v1121_v42 = vld [vmem:[#allocation4 + $0x18] sm:$0xff]  ;;  %1099 = vst [vmem:[#allocation4 + $0x30] sm:$0xf0] %v1095_v41  ;;  %v1128_v63 = vpack.c.bf16 %v1120_v43, %v1118_v48 }
 0x3cc   : > { %v1129_v47 = vpack.c.bf16 %v1121_v42, %v1119_v60 }
 0x3ce   : > { %1162 = vmatprep.subr.bf16.mxu0 %v1129_v47  ;;  %v1125_v49 = vld [vmem:[#allocation4 + $0x38] sm:$0xff] }
 0x3cf   : > { %1163 = vmatpush1.bf16.msra.mxu0 %v1128_v63  ;;  %v1131_v45 = vpack.c.bf16 %v1125_v49, %v1123_v44 }
 0x3d1   : > { %1164 = vmatprep.subr.bf16.mxu0 %v1131_v45 }
 0x3d2   : > { %v1124_v52 = vld [vmem:[#allocation4 + $0x30] sm:$0xff] }
 0x3d3   : > { %v1130_v53 = vpack.c.bf16 %v1124_v52, %v1122_v51 }
 0x3d5   : > { %1165 = vmatpush1.bf16.msra.mxu0 %v1130_v53 }
 0x3d6   : > { %1998 = vmatprep.subr.msk.bf16.mxu0 %vm1155_vm10, %v1133_v54  ;;  %v1139_v59 = vpop.permute.xlu1 %1138 }
 0x3d9   : > { %1167 = vmatpush1.bf16.msra.mxu0 %v1157_v56 }
 0x3da   : > { %v1144_v0 = vpop.permute.xlu0 %1143 }
 0x3dc   : > { %1999 = vmatmul.mubr.msk.bf16.vlgmr.msra.gmra.mrb[0].mxu0 %vm1151_vm11, %v2109_v58 }
 0x3dd   : > { %1890 = vmatprep.mubr.bf16.mxu0 %v2200_v7 }
 0x4af   : > { %v1196_v57 = vpop.f32.mrb[0].mxu0 }
 0x4b0   : > { %v2612_v61 = vadd.f32 %v1196_v57, %v1139_v59  ;;  %v1198_v62 = vpop.f32.mrb[1].mxu0 }
 0x4b1   : > { %v2614_v1 = vadd.f32 %v1198_v62, %v1139_v59  ;;  %v1200_v2 = vpop.f32.mrb[2].mxu0 }
 0x4b2   : > { %v2617_v3 = vmul.f32 0.70710677, %v2612_v61  ;;  %v2619_v4 = vadd.f32 %v1200_v2, %v1144_v0  ;;  %v1202_v5 = vpop.f32.mrb[3].mxu0 }
 0x4b3   : > { %v2622_v8 = vmul.f32 0.70710677, %v2614_v1  ;;  %v2628_v9 = vadd.f32 %v1202_v5, %v1144_v0 }
 0x4b4   : > { %v1221_v7 = vand.u32 2147483647, %v2617_v3  ;;  %v2626_v24 = vmul.f32 0.70710677, %v2619_v4  ;;  %vm1213_vm12 = vcmp.ge.f32.partialorder %v2617_v3, 0.0 }
 0x4b5   : > { %v1222_v12 = vand.u32 2147483647, %v2622_v8  ;;  %v2633_v17 = vmul.f32 0.70710677, %v2628_v9  ;;  %vm1214_vm13 = vcmp.ge.f32.partialorder %v2622_v8, 0.0 }
 0x4b6   : > { %v1225_v13 = vmul.f32 0.3275911, %v1221_v7  ;;  %v1223_v15 = vand.u32 2147483647, %v2626_v24  ;;  %v1277_v11 = vsub.f32 0.0, %v1221_v7  ;;  %vm1215_vm14 = vcmp.ge.f32.partialorder %v2626_v24, 0.0 }
 0x4b7   : > { %v1226_v14 = vmul.f32 0.3275911, %v1222_v12  ;;  %v1224_v27 = vand.u32 2147483647, %v2633_v17  ;;  %v1278_v29 = vsub.f32 0.0, %v1222_v12  ;;  %vm1216_vm15 = vcmp.ge.f32.partialorder %v2633_v17, 0.0 }
 0x4b8   : > { %v1229_v16 = vadd.f32 1.0, %v1225_v13  ;;  %v1227_v25 = vmul.f32 0.3275911, %v1223_v15  ;;  %v1281_v10 = vmul.f32 %v1277_v11, %v1221_v7  ;;  %v1279_v32 = vsub.f32 0.0, %v1223_v15 }
 0x4b9   : > { %v1230_v23 = vadd.f32 1.0, %v1226_v14  ;;  %v1228_v30 = vmul.f32 0.3275911, %v1224_v27  ;;  %v1282_v34 = vmul.f32 %v1278_v29, %v1222_v12  ;;  %v1280_v37 = vsub.f32 0.0, %v1224_v27 }
 0x4ba   : > { %2115 = vrcp.f32 %v1229_v16  ;;  %v1231_v28 = vadd.f32 1.0, %v1227_v25  ;;  %v1285_v40 = vmul.f32 1.442695, %v1281_v10  ;;  %v1283_v41 = vmul.f32 %v1279_v32, %v1223_v15 }
 0x4bb   : > { %2117 = vrcp.f32 %v1230_v23  ;;  %v1232_v31 = vadd.f32 1.0, %v1228_v30  ;;  %v1287_v48 = vmul.f32 1.442695, %v1282_v34  ;;  %v1284_v44 = vmul.f32 %v1280_v37, %v1224_v27 }
 0x4bc   : > { %2119 = vrcp.f32 %v1231_v28  ;;  %v1289_v51 = vmul.f32 1.442695, %v1283_v41  ;;  %v2217_v37 = vmov -1.0  }
 0x4bd   : > { %2121 = vrcp.f32 %v1232_v31  ;;  %v1291_v56 = vmul.f32 1.442695, %v1284_v44 }
 0x4be   : > { %2123 = vpow2.f32 %v1285_v40 }
 0x4bf   : > { %2125 = vpow2.f32 %v1287_v48 }
 0x4c0   : > { %2127 = vpow2.f32 %v1289_v51  ;;  %v1207_v51 = vmul.f32 0.5, %v2619_v4 }
 0x4c1   : > { %2129 = vpow2.f32 %v1291_v56 }
 0x4c4   : > { %v2116_v26 = vpop.eup %2115 }
 0x4c5   : > { %v2118_v33 = vpop.eup %2117  ;;  %v1241_v35 = vmul.f32 1.0614054, %v2116_v26 }
 0x4c6   : > { %v1242_v36 = vmul.f32 1.0614054, %v2118_v33  ;;  %v2120_v39 = vpop.eup %2119 }
 0x4c7   : > { %v1245_v38 = vadd.f32 -1.4531521, %v1241_v35  ;;  %v1243_v43 = vmul.f32 1.0614054, %v2120_v39  ;;  %v2122_v47 = vpop.eup %2121 }
 0x4c8   : > { %v1246_v60 = vadd.f32 -1.4531521, %v1242_v36  ;;  %v1244_v46 = vmul.f32 1.0614054, %v2122_v47  ;;  %v2124_v27 = vpop.eup %2123 }
 0x4c9   : > { %v1249_v42 = vmul.f32 %v2116_v26, %v1245_v38  ;;  %v1247_v45 = vadd.f32 -1.4531521, %v1243_v43  ;;  %v2126_v30 = vpop.eup %2125  ;;  %v1217_v38 = vsel %vm1213_vm12, 1.0, %v2217_v37 }
 0x4ca   : > { %v1250_v63 = vmul.f32 %v2118_v33, %v1246_v60  ;;  %v1248_v54 = vadd.f32 -1.4531521, %v1244_v46  ;;  %v2128_v36 = vpop.eup %2127 }
 0x4cb   : > { %v1253_v49 = vadd.f32 1.4214138, %v1249_v42  ;;  %v1251_v53 = vmul.f32 %v2120_v39, %v1247_v45  ;;  %v2130_v41 = vpop.eup %2129  ;;  %v1205_v42 = vmul.f32 0.5, %v2612_v61 }
 0x4cc   : > { %v1254_v50 = vadd.f32 1.4214138, %v1250_v63  ;;  %v1252_v57 = vmul.f32 %v2122_v47, %v1248_v54  ;;  %v1206_v63 = vmul.f32 0.5, %v2614_v1 }
 0x4cd   : > { %v1257_v52 = vmul.f32 %v2116_v26, %v1253_v49  ;;  %v1255_v59 = vadd.f32 1.4214138, %v1251_v53  ;;  %v1219_v49 = vsel %vm1215_vm14, 1.0, %v2217_v37 }
 0x4ce   : > { %v1258_v55 = vmul.f32 %v2118_v33, %v1254_v50  ;;  %v1256_v5 = vadd.f32 1.4214138, %v1252_v57 }
 0x4cf   : > { %v1261_v58 = vadd.f32 -0.28449672, %v1257_v52  ;;  %v1259_v2 = vmul.f32 %v2120_v39, %v1255_v59 }
 0x4d0   : > { %v1262_v62 = vadd.f32 -0.28449672, %v1258_v55  ;;  %v1260_v14 = vmul.f32 %v2122_v47, %v1256_v5  ;;  %v1208_v55 = vmul.f32 0.5, %v2628_v9  ;;  %v1314_v9 = vld [vmem:[%s2997_s9 + $0x8] sm:$0xff] }
 0x4d1   : > { %v1265_v0 = vmul.f32 %v2116_v26, %v1261_v58  ;;  %v1263_v13 = vadd.f32 -0.28449672, %v1259_v2 }
 0x4d2   : > { %v1266_v7 = vmul.f32 %v2118_v33, %v1262_v62  ;;  %v1264_v25 = vadd.f32 -0.28449672, %v1260_v14 }
 0x4d3   : > { %v1269_v12 = vadd.f32 0.2548296, %v1265_v0  ;;  %v1267_v23 = vmul.f32 %v2120_v39, %v1263_v13  ;;  %v1316_v13 = vld [vmem:[%s2998_s10 + $0x8] sm:$0xff] }
 0x4d4   : > { %v1270_v15 = vadd.f32 0.2548296, %v1266_v7  ;;  %v1268_v29 = vmul.f32 %v2122_v47, %v1264_v25  ;;  %v1315_v7 = vld [vmem:[%s2998_s10] sm:$0xff] }
 0x4d5   : > { %v1273_v16 = vmul.f32 %v2116_v26, %v1269_v12  ;;  %v1271_v11 = vadd.f32 0.2548296, %v1267_v23  ;;  %v1218_v26 = vsel %vm1214_vm13, 1.0, %v2217_v37  ;;  %v1313_v12 = vld [vmem:[%s2997_s9] sm:$0xff] }
 0x4d6   : > { %v1274_v28 = vmul.f32 %v2118_v33, %v1270_v15  ;;  %v1272_v34 = vadd.f32 0.2548296, %v1268_v29 }
 0x4d7   : > { %v1293_v31 = vmul.f32 %v2124_v27, %v1273_v16  ;;  %v1275_v35 = vmul.f32 %v2120_v39, %v1271_v11 }
 0x4d8   : > { %v1294_v10 = vmul.f32 %v2126_v30, %v1274_v28  ;;  %v1276_v33 = vmul.f32 %v2122_v47, %v1272_v34  ;;  %v1220_v47 = vsel %vm1216_vm15, 1.0, %v2217_v37 }
 0x4d9   : > { %v1297_v32 = vsub.f32 1.0, %v1293_v31  ;;  %v1295_v3 = vmul.f32 %v2128_v36, %v1275_v35 }
 0x4da   : > { %v1298_v40 = vsub.f32 1.0, %v1294_v10  ;;  %v1296_v39 = vmul.f32 %v2130_v41, %v1276_v33 }
 0x4db   : > { %v1301_v60 = vmul.f32 %v1297_v32, %v1217_v38  ;;  %v1299_v43 = vsub.f32 1.0, %v1295_v3 }
 0x4dc   : > { %v1302_v8 = vmul.f32 %v1298_v40, %v1218_v26  ;;  %v1300_v50 = vsub.f32 1.0, %v1296_v39 }
 0x4dd   : > { %v1305_v48 = vadd.f32 1.0, %v1301_v60  ;;  %v1303_v46 = vmul.f32 %v1299_v43, %v1219_v49 }
 0x4de   : > { %v1306_v44 = vadd.f32 1.0, %v1302_v8  ;;  %v1304_v52 = vmul.f32 %v1300_v50, %v1220_v47 }
 0x4df   : > { %v2642_v45 = vmul.f32 %v1305_v48, %v1205_v42  ;;  %v1307_v61 = vadd.f32 1.0, %v1303_v46 }
 0x4e0   : > { %v2644_v24 = vmul.f32 %v1306_v44, %v1206_v63  ;;  %v1308_v56 = vadd.f32 1.0, %v1304_v52 }
 0x4e1   : > { %v1330_v53 = vmul.f32 %v2642_v45, %v2642_v45  ;;  %v2653_v54 = vmul.f32 %v1307_v61, %v1207_v51 }
 0x4e2   : > { %v1317_v17 = vadd.f32 %v2644_v24, %v2642_v45  ;;  %v1331_v1 = vmul.f32 %v2644_v24, %v2644_v24  ;;  %v2656_v59 = vmul.f32 %v1308_v56, %v1208_v55 }
 0x4e3   : > { %v1332_v57 = vmul.f32 %v2653_v54, %v2653_v54 }
 0x4e4   : > { %v1334_v58 = vadd.f32 %v1331_v1, %v1330_v53  ;;  %v1318_v4 = vadd.f32 %v1317_v17, %v2653_v54  ;;  %v1333_v0 = vmul.f32 %v2656_v59, %v2656_v59 }
 0x4e6   : > { %v1319_v62 = vadd.f32 %v1318_v4, %v2656_v59  ;;  %v1335_v2 = vadd.f32 %v1334_v58, %v1332_v57 }
 0x4e8   : > { %1320 = vadd.xlane.f32.xlu1 %v1319_v62  ;;  %v1336_v5 = vadd.f32 %v1335_v2, %v1333_v0 }
 0x4ea   : > { %1337 = vadd.xlane.f32.xlu0 %v1336_v5 }
 0x4f9   : > { %1368 = vperm.xlu1 %2095, %v1314_v9  }
 0x4fd   : > { %1377 = vperm.xlu1 %2095, %v1315_v7  }
 0x500   : > { %1363 = vperm.xlu0 %2094, %v1313_v12  }
 0x501   : > { %1401 = vrot.lane.b32.xlu1 %v2378_v19, %s3037_s5 }
 0x504   : > { %1382 = vperm.xlu0 %2094, %v1316_v13  }
 0x505   : > { %1475 = vrot.lane.b32.xlu1 %v2382_v21, %s3034_s2 }
 0x508   : > { %1403 = vrot.lane.b32.xlu0 %v2380_v20, %s3037_s5 }
 0x509   : > { %1519 = vrot.lane.b32.xlu1 %v2378_v19, %s3035_s25 }
 0x50c   : > { %1477 = vrot.lane.b32.xlu0 %v2385_v22, %s3034_s2 }
 0x50d   : > { %1567 = vrot.lane.b32.xlu1 %v2382_v21, %s3038_s0 }
 0x510   : > { %1521 = vrot.lane.b32.xlu0 %v2380_v20, %s3035_s25 }
 0x511   : > { %1611 = vrot.lane.b32.xlu1 %v2378_v19, %s3039_s4 }
 0x514   : > { %1569 = vrot.lane.b32.xlu0 %v2385_v22, %s3038_s0 }
 0x515   : > { %1681 = vrot.lane.b32.xlu1 %v2382_v21, %s3040_s26 }
 0x518   : > { %1613 = vrot.lane.b32.xlu0 %v2380_v20, %s3039_s4 }
 0x51c   : > { %1683 = vrot.lane.b32.xlu0 %v2385_v22, %s3040_s26 }
 0x575   : > { %v1321_v14 = vpop.xlane.xlu1 %1320 }
 0x576   : > { %v1322_v15 = vrot.slane %v1321_v14, 4 }
 0x577   : > { %v1338_v16 = vpop.xlane.xlu0 %1337 }
 0x578   : > { %v1323_v23 = vadd.f32 %v1322_v15, %v1321_v14  ;;  %v1339_v25 = vrot.slane %v1338_v16, 4 }
 0x579   : > { %v2700_v27 = vpop.permute.xlu1 %1368 }
 0x57a   : > { %v1324_v19 = vrot.slane %v1323_v23, 2  ;;  %v1340_v28 = vadd.f32 %v1339_v25, %v1338_v16 }
 0x57c   : > { %v1341_v30 = vrot.slane %v1340_v28, 2  ;;  %v1325_v31 = vadd.f32 %v1324_v19, %v1323_v23 }
 0x57d   : > { %v1378_v11 = vpop.permute.xlu1 %1377 }
 0x57e   : > { %v1326_v29 = vrot.slane %v1325_v31, 1  ;;  %v1342_v21 = vadd.f32 %v1341_v30, %v1340_v28 }
 0x57f   : > { %v1364_v10 = vpop.permute.xlu0 %1363 }
 0x580   : > { %v1327_v32 = vadd.f32 %v1326_v29, %v1325_v31  ;;  %v1343_v20 = vrot.slane %v1342_v21, 1 }
 0x581   : > { %v2702_v35 = vpop.permute.xlu1 %1401 }
 0x582   : > { %2022 = vpush %v1327_v32  ;;  %v1344_v22 = vadd.f32 %v1343_v20, %v1342_v21  ;;  %v1409_v34 = vmul.f32 0.0, %v2702_v35 }
 0x583   : > { %v1383_v36 = vpop.permute.xlu0 %1382 }
 0x584   : > { %2024 = vpush %v1344_v22  ;;  %1421 = vrot.lane.b32.xlu1 %v1409_v34, %s3040_s26  ;;  %1427 = vrot.lane.b32.xlu0 %v1409_v34, %s3040_s26 }
 0x585   : > { %v2707_v37 = vpop.permute.xlu1 %1475 }
 0x586   : > { %v1483_v38 = vmul.f32 0.0, %v2707_v37 }
 0x587   : > { %v2710_v26 = vpop.permute.xlu0 %1403 }
 0x588   : > { %2097 = vrot.lane.b32.xlu1 %v2199_v6, %s3041_s16  ;;  %1495 = vrot.lane.b32.xlu0 %v1483_v38, %s3039_s4  ;;  %v1405_v9 = vsel %vm548_vm4, %v2702_v35, %v2710_v26 }
 0x589   : > { %v2715_v40 = vpop.permute.xlu1 %1519 }
 0x58a   : > { %v1527_v60 = vmul.f32 0.0, %v2715_v40 }
 0x58b   : > { %v2718_v3 = vpop.permute.xlu0 %1477 }
 0x58c   : > { %1501 = vrot.lane.b32.xlu1 %v1483_v38, %s3039_s4  ;;  %1539 = vrot.lane.b32.xlu0 %v1527_v60, %s3038_s0 }
 0x58d   : > { %v2734_v47 = vpop.permute.xlu1 %1567 }
 0x58f   : > { %v2722_v33 = vpop.permute.xlu0 %1521 }
 0x590   : > { %1545 = vrot.lane.b32.xlu1 %v1527_v60, %s3038_s0 }
 0x591   : > { %v2742_v0 = vpop.permute.xlu1 %1611 }
 0x593   : > { %v2725_v41 = vpop.permute.xlu0 %1569 }
 0x594   : > { %v1577_v42 = vmul.f32 0.0, %v2725_v41 }
 0x595   : > { %v1682_v20 = vpop.permute.xlu1 %1681 }
 0x596   : > { %1591 = vrot.lane.b32.xlu1 %v1577_v42, %s3035_s25 }
 0x597   : > { %v1614_v8 = vpop.permute.xlu0 %1613 }
 0x598   : > { %v1621_v48 = vmul.f32 0.0, %v1614_v8 }
 0x59a   : > { %1597 = vrot.lane.b32.xlu1 %v1577_v42, %s3035_s25 }
 0x59b   : > { %v1684_v32 = vpop.permute.xlu0 %1683 }
 0x59c   : > { %v1685_v22 = vsel %vm886_vm6, %v1682_v20, %v1684_v32  ;;  %v1691_v34 = vmul.f32 0.0, %v1684_v32 }
 0x59e   : > { %1635 = vrot.lane.b32.xlu1 %v1621_v48, %s3034_s2 }
 0x5a2   : > { %1641 = vrot.lane.b32.xlu1 %v1621_v48, %s3034_s2  ;;  %v1840_v48 = vpack.c.bf16 %v2376_v18, %v2376_v18 }
 0x5a6   : > { %2102 = vrot.lane.b32.xlu1 %v2199_v6, %s3036_s17 }
 0x5b3   : > { %s2023_s30 = spop %2022 }
 0x5b4   : > { %v1329_v43 = vstv %s2023_s30  ;;  %s2011_s30 = sshll.u32 %s2320_s22, 8  ;;  %s2218_s22 = smov [#allocation5]  }
 0x5b5   : > { %v1347_v39 = vmul.f32 0.00024414063, %v1329_v43  ;;  %s2025_s23 = spop %2024  ;;  %s2946_s3 = scalar_lea.hbm %s3003_s15, %s2011_s30 }
 0x5b6   : > { %v1346_v63 = vstv %s2025_s23 }
 0x5b7   : > { %v1348_v44 = vmul.f32 0.00024414063, %v1346_v63  ;;  %v1349_v49 = vmul.f32 %v1347_v39, %v1347_v39  ;;  %v1351_v51 = vsub.f32 %v2642_v45, %v1347_v39  ;;  %v1352_v61 = vsub.f32 %v2644_v24, %v1347_v39 }
 0x5b8   : > { %v1353_v52 = vsub.f32 %v2653_v54, %v1347_v39  ;;  %v1354_v6 = vsub.f32 %v2656_v59, %v1347_v39  ;;  %v2746_v45 = vsel %vm1029_vm9, %v2742_v0, %v1614_v8  ;;  %v1838_v8 = vcombine.high %v2376_v18, %v2376_v18  ;;  %v1836_v18 = vld [vmem:[%s3001_s13] sm:$0xf] }
 0x5b9   : > { %v1350_v46 = vsub.f32 %v1348_v44, %v1349_v49  ;;  %v1853_v44 = vsel %vm1155_vm10, %v1840_v48, 0  ;;  %v2861_v49 = vld [vmem:[%s2999_s11] sm:$0xff] }
 0x5ba   : > { %v1841_v63 = vpack.c.bf16 %v1838_v8, %v1838_v8 }
 0x5bb   : > { %v1355_v50 = vadd.f32 1e-05, %v1350_v46  ;;  %v2001_v46 = vcombine.high %v2861_v49, %v2861_v49 }
 0x5bc   : > { %2003 = vmatprep.subr.msk.bf16.mxu0 %vm1155_vm10, %v1841_v63 }
 0x5bd   : > { %2131 = vrsqrt.f32 %v1355_v50  ;;  %1859 = vmatpush1.bf16.msra.mxu0 %v1853_v44  ;;  %2002 = vmatprep.mubr.msk.bf16.mxu1 %vm1011_vm7, %v2001_v46 }
 0x5c0   : > { %2004 = vmatmul.mubr.msk.bf16.vlgmr.msra.gmra.mrb[4].mxu0 %vm1848_vm2, %v1836_v18 }
 0x5c7   : > { %v2132_v53 = vpop.eup %2131 }
 0x5c8   : > { %v1357_v17 = vmul.f32 %v2132_v53, %v1351_v51  ;;  %v1358_v1 = vmul.f32 %v2132_v53, %v1352_v61  ;;  %v1359_v55 = vmul.f32 %v2132_v53, %v1353_v52  ;;  %v1360_v56 = vmul.f32 %v2132_v53, %v1354_v6  ;;  %v1842_v51 = vld [vmem:[%s3002_s14] sm:$0xff] }
 0x5ca   : > { %v1371_v58 = vmul.f32 %v1364_v10, %v1357_v17  ;;  %v1372_v4 = vmul.f32 %v1364_v10, %v1358_v1  ;;  %v1373_v57 = vmul.f32 %v2700_v27, %v1359_v55  ;;  %v1374_v62 = vmul.f32 %v2700_v27, %v1360_v56 }
 0x5cb   : > { %v1479_v27 = vsel %vm623_vm1, %v2707_v37, %v2718_v3  ;;  %v1571_v37 = vsel %vm1048_vm8, %v2734_v47, %v2725_v41 }
 0x5cc   : > { %v2748_v24 = vadd.f32 %v1378_v11, %v1371_v58  ;;  %v2750_v54 = vadd.f32 %v1378_v11, %v1372_v4  ;;  %v2752_v59 = vadd.f32 %v1383_v36, %v1373_v57  ;;  %v2754_v2 = vadd.f32 %v1383_v36, %v1374_v62 }
 0x5cd   : > { %v1523_v11 = vsel %vm593_vm0, %v2715_v40, %v2722_v33 }
 0x5ce   : > { %1453 = vrot.lane.b32.xlu1 %v2748_v24, %s3041_s16  ;;  %v2760_v5 = vmul.f32 %v2746_v45, %v2754_v2  ;;  %1455 = vrot.lane.b32.xlu0 %v2750_v54, %s3041_s16  ;;  %v1410_v7 = vmul.f32 %v1405_v9, %v2748_v24  ;;  %v1771_v12 = vpack.c.bf16 %v2754_v2, %v2750_v54 }
 0x5cf   : > { %v1770_v13 = vpack.c.bf16 %v2752_v59, %v2748_v24  ;;  %v1413_v14 = vmul.f32 %v1405_v9, %v2752_v59  ;;  %v1485_v15 = vmul.f32 %v2718_v3, %v2750_v54  ;;  %v1411_v16 = vmul.f32 %v2710_v26, %v2750_v54 }
 0x5d0   : > { %v1488_v23 = vmul.f32 %v2718_v3, %v2754_v2  ;;  %v1414_v25 = vmul.f32 %v2710_v26, %v2754_v2  ;;  %v1529_v19 = vmul.f32 %v2722_v33, %v2750_v54  ;;  %v1484_v28 = vmul.f32 %v1479_v27, %v2748_v24  ;;  %v1780_v3 = vld [vmem:[%s3000_s12] sm:$0xff] }
 0x5d1   : > { %v1532_v30 = vmul.f32 %v2722_v33, %v2754_v2  ;;  %v1487_v31 = vmul.f32 %v1479_v27, %v2752_v59  ;;  %v1528_v29 = vmul.f32 %v1523_v11, %v2748_v24  ;;  %v1578_v21 = vmul.f32 %v2734_v47, %v2752_v59 }
 0x5d2   : > { %1459 = vrot.lane.b32.xlu1 %v2752_v59, %s3041_s16  ;;  %1461 = vrot.lane.b32.xlu0 %v2754_v2, %s3041_s16  ;;  %v1531_v10 = vmul.f32 %v1523_v11, %v2752_v59  ;;  %v1622_v35 = vmul.f32 %v2742_v0, %v2752_v59  ;;  %v1690_v36 = vmul.f32 %v1685_v22, %v2750_v54 }
 0x5d3   : > { %v1693_v38 = vmul.f32 %v1685_v22, %v2754_v2  ;;  %v1576_v26 = vmul.f32 %v1571_v37, %v2750_v54  ;;  %v1689_v40 = vmul.f32 %v1682_v20, %v2748_v24  ;;  %v1579_v60 = vmul.f32 %v1571_v37, %v2754_v2 }
 0x5d4   : > { %v1575_v33 = vmul.f32 %v2734_v47, %v2748_v24  ;;  %v1620_v41 = vmul.f32 %v2746_v45, %v2750_v54  ;;  %v1619_v39 = vmul.f32 %v2742_v0, %v2748_v24  ;;  %v1692_v47 = vmul.f32 %v1682_v20, %v2752_v59 }
 0x5d6   : > { %1423 = vrot.lane.b32.xlu1 %v1410_v7, %s3040_s26  ;;  %1659 = vrot.lane.b32.xlu0 %v2750_v54, %s3036_s17 }
 0x5da   : > { %1429 = vrot.lane.b32.xlu1 %v1413_v14, %s3040_s26  ;;  %1665 = vrot.lane.b32.xlu0 %v2754_v2, %s3036_s17 }
 0x5de   : > { %1499 = vrot.lane.b32.xlu1 %v1485_v15, %s3039_s4  ;;  %1425 = vrot.lane.b32.xlu0 %v1411_v16, %s3040_s26 }
 0x5e2   : > { %1505 = vrot.lane.b32.xlu1 %v1488_v23, %s3039_s4  ;;  %1431 = vrot.lane.b32.xlu0 %v1414_v25, %s3040_s26 }
 0x5e6   : > { %1543 = vrot.lane.b32.xlu1 %v1529_v19, %s3038_s0  ;;  %1497 = vrot.lane.b32.xlu0 %v1484_v28, %s3039_s4 }
 0x5ea   : > { %1549 = vrot.lane.b32.xlu1 %v1532_v30, %s3038_s0  ;;  %1503 = vrot.lane.b32.xlu0 %v1487_v31, %s3039_s4 }
 0x5ee   : > { %1657 = vrot.lane.b32.xlu1 %v2748_v24, %s3036_s17  ;;  %1541 = vrot.lane.b32.xlu0 %v1528_v29, %s3038_s0 }
 0x5f2   : > { %1593 = vrot.lane.b32.xlu1 %v1578_v21, %s3035_s25  ;;  %1547 = vrot.lane.b32.xlu0 %v1531_v10, %s3038_s0 }
 0x5f6   : > { %1637 = vrot.lane.b32.xlu1 %v1622_v35, %s3034_s2  ;;  %1663 = vrot.lane.b32.xlu0 %v2752_v59, %s3036_s17  ;;  %v1422_v42 = vpop.permute.xlu1 %1421  ;;  %v1428_v17 = vpop.permute.xlu0 %1427 }
 0x5fa   : > { %1703 = vrot.lane.b32.xlu1 %v1690_v36, %s3037_s5  ;;  %1705 = vrot.lane.b32.xlu0 %v1691_v34, %s3037_s5  ;;  %v2098_v43 = vpop.permute.xlu1 %2097  ;;  %v1496_v55 = vpop.permute.xlu0 %1495 }
 0x5fb   : > { %v2099_v4 = vunpack.i.l.bf16 %v2098_v43 }
 0x5fe   : > { %1709 = vrot.lane.b32.xlu1 %v1693_v38, %s3037_s5  ;;  %1589 = vrot.lane.b32.xlu0 %v1576_v26, %s3035_s25  ;;  %v2871_v50 = vpop.permute.xlu1 %1501  ;;  %v1540_v58 = vpop.permute.xlu0 %1539 }
 0x602   : > { %1701 = vrot.lane.b32.xlu1 %v1689_v40, %s3037_s5  ;;  %1595 = vrot.lane.b32.xlu0 %v1579_v60, %s3035_s25  ;;  %v2879_v61 = vpop.permute.xlu1 %1545 }
 0x606   : > { %1783 = vperm.xlu1 %2095, %v1780_v3   ;;  %1587 = vrot.lane.b32.xlu0 %v1575_v33, %s3035_s25 }
 0x608   : > { %v2881_v52 = vpop.permute.xlu1 %1591 }
 0x60a   : > { %1633 = vrot.lane.b32.xlu0 %v1620_v41, %s3034_s2 }
 0x60c   : > { %v2883_v6 = vpop.permute.xlu1 %1597 }
 0x60e   : > { %1639 = vrot.lane.b32.xlu0 %v2760_v5, %s3034_s2  ;;  %v2100_v5 = vunpack.i.h.bf16 %v2098_v43 }
 0x610   : > { %v2885_v53 = vpop.permute.xlu1 %1635 }
 0x612   : > { %1631 = vrot.lane.b32.xlu0 %v1619_v39, %s3034_s2  ;;  %s2137_s2 = sshll.u32 %s2218_s22, 4  ;;  %s2138_s2 = int_to_ptr.vmem [resolvable:$false] %s2137_s2 }
 0x613   : > { %s2139_s26 = scalar_lea.vmem %s2138_s2, 512 }
 0x614   : > { %v2887_v1 = vpop.permute.xlu1 %1641 }
 0x616   : > { %1711 = vrot.lane.b32.xlu0 %v1691_v34, %s3037_s5 }
 0x618   : > { %v2103_v56 = vpop.permute.xlu1 %2102 }
 0x619   : > { %v2104_v15 = vunpack.i.l.bf16 %v2103_v56  ;;  %v2105_v19 = vunpack.i.h.bf16 %v2103_v56 }
 0x61a   : > { %1707 = vrot.lane.b32.xlu0 %v1692_v47, %s3037_s5  ;;  %s498_s5 = sand.u32 1, %s2187_s19  }
 0x61b   : > { %s1993_s16 = sshll.u32 %s498_s5, 4  ;;  %s1904_s0 = scalar_lea.sflag [#allocation6], %s498_s5 }
 0x61c   : > { %s500_s23 = scalar_lea.vmem [#allocation5], %s1993_s16 }
 0x61d   : > { %s1918_s17 = sshll.u32 %s500_s23, 4  ;;  %s2948_s17 = int_to_ptr.vmem [resolvable:$true] %s1918_s17 }
 0x61e   : > { %1845 = vperm.xlu0 %2094, %v1842_v51   ;;  %s2133_s4 = scalar_lea.vmem %s2948_s17, 256  ;;  %p2140_p0 = scmp.lt.s32.totalorder %s2948_s17, %s2138_s2 }
 0x61f   : > { %p2134_p11 = scmp.ne.s32.totalorder %s2948_s17, %s2133_s4  ;;  %p2141_p1 = scmp.lt.s32.totalorder %s2139_s26, %s2133_s4 }
 0x621   : > { %p2135_p12 = pnand %p2134_p11, %p2337_p5  ;;  %p2142_p2 = por %p2141_p1, %p2140_p0 }
 0x623   : > { %p2136_p13 = pneg %p2135_p12 }
 0x625   : > { %p2143_p3 = pnand %p2142_p2, %p2136_p13 }
 0x640   : > { %v1454_v57 = vpop.permute.xlu1 %1453  ;;  %v1456_v62 = vpop.permute.xlu0 %1455 }
 0x641   : > { %v1463_v0 = vsel %vm1011_vm7, %v2099_v4, %v1454_v57  ;;  %v1464_v45 = vsel %vm1011_vm7, %v1454_v57, %v1456_v62 }
 0x642   : > { %1471 = vst [vmem:[#allocation4 + $0x20] sm:$0xff] %v1463_v0  ;;  %1472 = vst [vmem:[#allocation4 + $0x28] sm:$0xff] %v1464_v45 }
 0x644   : > { %v1460_v9 = vpop.permute.xlu1 %1459  ;;  %v1462_v7 = vpop.permute.xlu0 %1461 }
 0x645   : > { %v1465_v14 = vsel %vm1011_vm7, %v2100_v5, %v1460_v9  ;;  %v1466_v16 = vsel %vm1011_vm7, %v1460_v9, %v1462_v7 }
 0x646   : > { %1473 = vst [vmem:[#allocation4 + $0x30] sm:$0xff] %v1465_v14  ;;  %1474 = vst [vmem:[#allocation4 + $0x38] sm:$0xff] %v1466_v16  ;;  %v1765_v26 = vpack.c.bf16 %v1466_v16, %v1464_v45  ;;  %v1764_v33 = vpack.c.bf16 %v1465_v14, %v1463_v0 }
 0x648   : > { %v1424_v23 = vpop.permute.xlu1 %1423  ;;  %v1660_v25 = vpop.permute.xlu0 %1659 }
 0x649   : > { %v1433_v27 = vsel %vm886_vm6, %v1422_v42, %v1424_v23  ;;  %v2895_v28 = vsel %vm687_vm3, %v1660_v25, %v2104_v15 }
 0x64a   : > { %1441 = vst [vmem:[#allocation4] sm:$0xff] %v1433_v27 }
 0x64c   : > { %v1430_v30 = vpop.permute.xlu1 %1429  ;;  %v1666_v31 = vpop.permute.xlu0 %1665 }
 0x64d   : > { %v1435_v11 = vsel %vm886_vm6, %v1428_v17, %v1430_v30  ;;  %v2899_v29 = vsel %vm687_vm3, %v1666_v31, %v2105_v19 }
 0x64e   : > { %1443 = vst [vmem:[#allocation4 + $0x10] sm:$0xff] %v1435_v11  ;;  %v1762_v37 = vpack.c.bf16 %v1435_v11, %v1433_v27  ;;  %v1777_v11 = vpack.c.bf16 %v2899_v29, %v2895_v28 }
 0x650   : > { %v1500_v21 = vpop.permute.xlu1 %1499  ;;  %v1426_v10 = vpop.permute.xlu0 %1425 }
 0x651   : > { %v1434_v32 = vsel %vm886_vm6, %v1424_v23, %v1426_v10 }
 0x652   : > { %1442 = vst [vmem:[#allocation4 + $0x8] sm:$0xff] %v1434_v32 }
 0x654   : > { %v1506_v20 = vpop.permute.xlu1 %1505  ;;  %v1432_v35 = vpop.permute.xlu0 %1431 }
 0x655   : > { %v1436_v22 = vsel %vm886_vm6, %v1430_v30, %v1432_v35 }
 0x656   : > { %1444 = vst [vmem:[#allocation4 + $0x18] sm:$0xff] %v1436_v22  ;;  %v1763_v34 = vpack.c.bf16 %v1436_v22, %v1434_v32  ;;  %v2000_v22 = vcombine.low %v2861_v49, %v2861_v49 }
 0x658   : > { %v1544_v36 = vpop.permute.xlu1 %1543  ;;  %v1498_v38 = vpop.permute.xlu0 %1497  ;;  %1795 = vmatprep.subr.bf16.mxu1 %v1763_v34 }
 0x659   : > { %v1507_v40 = vsel %vm1029_vm9, %v1496_v55, %v1498_v38  ;;  %v1508_v60 = vsel %vm1029_vm9, %v1498_v38, %v1500_v21  ;;  %1796 = vmatpush1.bf16.msra.mxu1 %v1762_v37 }
 0x65a   : > { %1515 = vst [vmem:[#allocation4 + $0x40] sm:$0xff] %v1507_v40  ;;  %1516 = vst [vmem:[#allocation4 + $0x48] sm:$0xff] %v1508_v60  ;;  %1797 = vmatprep.subr.bf16.mxu1 %v1765_v26 }
 0x65c   : > { %v1550_v3 = vpop.permute.xlu1 %1549  ;;  %v1504_v41 = vpop.permute.xlu0 %1503 }
 0x65d   : > { %v1509_v42 = vsel %vm1029_vm9, %v2871_v50, %v1504_v41  ;;  %v1510_v8 = vsel %vm1029_vm9, %v1504_v41, %v1506_v20  ;;  %1798 = vmatpush1.bf16.msra.mxu1 %v1764_v33 }
 0x65e   : > { %v1767_v48 = vpack.c.bf16 %v1510_v8, %v1508_v60  ;;  %v1766_v43 = vpack.c.bf16 %v1509_v42, %v1507_v40 }
 0x660   : > { %v1658_v39 = vpop.permute.xlu1 %1657  ;;  %v1542_v63 = vpop.permute.xlu0 %1541  ;;  %1799 = vmatprep.subr.bf16.mxu1 %v1767_v48 }
 0x661   : > { %v1669_v44 = vsel %vm687_vm3, %v1658_v39, %v1660_v25  ;;  %v1551_v46 = vsel %vm1048_vm8, %v1540_v58, %v1542_v63  ;;  %v1552_v18 = vsel %vm1048_vm8, %v1542_v63, %v1544_v36  ;;  %1800 = vmatpush1.bf16.msra.mxu1 %v1766_v43 }
 0x664   : > { %v1594_v47 = vpop.permute.xlu1 %1593  ;;  %v1548_v51 = vpop.permute.xlu0 %1547 }
 0x665   : > { %v1553_v50 = vsel %vm1048_vm8, %v2879_v61, %v1548_v51  ;;  %v1554_v17 = vsel %vm1048_vm8, %v1548_v51, %v1550_v3 }
 0x666   : > { %v1769_v55 = vpack.c.bf16 %v1554_v17, %v1552_v18  ;;  %v1768_v56 = vpack.c.bf16 %v1553_v50, %v1551_v46 }
 0x668   : > { %v1638_v4 = vpop.permute.xlu1 %1637  ;;  %v1664_v57 = vpop.permute.xlu0 %1663  ;;  %1801 = vmatprep.subr.bf16.mxu1 %v1769_v55 }
 0x669   : > { %v1671_v62 = vsel %vm687_vm3, %v1664_v57, %v1666_v31  ;;  %1802 = vmatpush1.bf16.msra.mxu1 %v1768_v56 }
 0x66a   : > { %1803 = vmatprep.subr.bf16.mxu1 %v1771_v12 }
 0x66c   : > { %v1704_v58 = vpop.permute.xlu1 %1703  ;;  %v1706_v0 = vpop.permute.xlu0 %1705 }
 0x66d   : > { %v1714_v45 = vsel %vm548_vm4, %v1704_v58, %v1706_v0  ;;  %1804 = vmatpush1.bf16.msra.mxu1 %v1770_v13 }
 0x670   : > { %v1710_v61 = vpop.permute.xlu1 %1709  ;;  %v1590_v5 = vpop.permute.xlu0 %1589 }
 0x671   : > { %v1600_v9 = vsel %vm593_vm0, %v1590_v5, %v2881_v52 }
 0x674   : > { %v1702_v7 = vpop.permute.xlu1 %1701  ;;  %v1596_v14 = vpop.permute.xlu0 %1595 }
 0x675   : > { %v1713_v15 = vsel %vm548_vm4, %v1702_v7, %v1704_v58  ;;  %v1601_v54 = vsel %vm593_vm0, %v1594_v47, %v1596_v14  ;;  %v1602_v2 = vsel %vm593_vm0, %v1596_v14, %v2883_v6 }
 0x676   : > { %v1773_v12 = vpack.c.bf16 %v1602_v2, %v1600_v9 }
 0x678   : > { %v1588_v16 = vpop.permute.xlu0 %1587  ;;  %1805 = vmatprep.subr.bf16.mxu1 %v1773_v12 }
 0x679   : > { %v1599_v24 = vsel %vm593_vm0, %v1588_v16, %v1590_v5 }
 0x67a   : > { %v1772_v59 = vpack.c.bf16 %v1601_v54, %v1599_v24 }
 0x67c   : > { %v1634_v13 = vpop.permute.xlu0 %1633  ;;  %1806 = vmatpush1.bf16.msra.mxu1 %v1772_v59 }
 0x67d   : > { %v1644_v52 = vsel %vm623_vm1, %v1634_v13, %v2885_v53  ;;  %v1776_v53 = vpack.c.bf16 %v1671_v62, %v1669_v44 }
 0x680   : > { %v1640_v23 = vpop.permute.xlu0 %1639 }
 0x681   : > { %v1645_v25 = vsel %vm623_vm1, %v1638_v4, %v1640_v23  ;;  %v1646_v27 = vsel %vm623_vm1, %v1640_v23, %v2887_v1 }
 0x682   : > { %v1775_v19 = vpack.c.bf16 %v1646_v27, %v1644_v52 }
 0x684   : > { %v1632_v30 = vpop.permute.xlu0 %1631  ;;  %1807 = vmatprep.subr.bf16.mxu1 %v1775_v19 }
 0x685   : > { %v1643_v6 = vsel %vm623_vm1, %v1632_v30, %v1634_v13  ;;  %v1784_v37 = vpop.permute.xlu1 %1783 }
 0x686   : > { %v1774_v31 = vpack.c.bf16 %v1645_v25, %v1643_v6 }
 0x688   : > { %v1712_v21 = vpop.permute.xlu0 %1711  ;;  %1808 = vmatpush1.bf16.msra.mxu1 %v1774_v31 }
 0x689   : > { %v1716_v10 = vsel %vm548_vm4, %v1710_v61, %v1712_v21  ;;  %1809 = vmatprep.subr.bf16.mxu1 %v1777_v11 }
 0x68a   : > { %v1779_v32 = vpack.c.bf16 %v1716_v10, %v1714_v45 }
 0x68c   : > { %v1708_v20 = vpop.permute.xlu0 %1707  ;;  %1810 = vmatpush1.bf16.msra.mxu1 %v1776_v53 }
 0x68d   : > { %v1715_v1 = vsel %vm548_vm4, %v1708_v20, %v1710_v61  ;;  %1811 = vmatprep.subr.bf16.mxu1 %v1779_v32 }
 0x68e   : > { %v1778_v35 = vpack.c.bf16 %v1715_v1, %v1713_v15 }
 0x690   : > { %1812 = vmatpush1.bf16.msra.mxu1 %v1778_v35 }
 0x693   : > { %1828 = vmatmul.mubr.bf16.vlgmr.msra.gmra.mrb[0].mxu1 %v2000_v22  ;;  %v1892_v28 = vpop.f32.mrb[4].mxu0 }
 0x694   : > { %v1894_v29 = vpop.f32.mrb[5].mxu0 }
 0x695   : > { %v1896_v34 = vpop.f32.mrb[6].mxu0 }
 0x696   : > { %v1897_v36 = vpop.f32.mrb[7].mxu0 }
 0x69d   : > { %v1846_v60 = vpop.permute.xlu0 %1845 }
 0x766   : > { %v1829_v38 = vpop.f32.mrb[0].mxu1 }
 0x767   : > { %v1830_v26 = vadd.f32 %v1829_v38, %v1784_v37  ;;  %v1831_v40 = vpop.f32.mrb[1].mxu1 }
 0x768   : > { %v1832_v3 = vadd.f32 %v1831_v40, %v1784_v37  ;;  %v1833_v33 = vpop.f32.mrb[2].mxu1 }
 0x769   : > { %v2013_v41 = vadd.f32 %v1846_v60, %v1830_v26  ;;  %v1834_v42 = vpop.f32.mrb[3].mxu1 }
 0x76a   : > { %v2016_v49 = vadd.f32 %v1846_v60, %v1832_v3 }
 0x76b   : > { %v2014_v8 = vadd.f32 %v2013_v41, %v1892_v28 }
 0x76c   : > { %v2017_v48 = vadd.f32 %v2016_v49, %v1894_v29 }
 0x76d   : > { %1901 = vst [vmem:[%s500_s23] sm:$0xff] %v2014_v8 }
 0x76e   : > { %1902 = vst [vmem:[%s500_s23 + $0x8] sm:$0xff] %v2017_v48 }
 0x76f   : > { %2146 = shalt.err (!%p2143_p3)
}
 0x770   : > { %s2147_s5 = scalar_lea.hbm %s2946_s3, 256  ;;  %s2151_s23 = scalar_lea.hbm %s3003_s15, 512 }
 0x771   : > { %p2148_p4 = scmp.ne.s32.totalorder %s2946_s3, %s2147_s5  ;;  %p2152_p9 = scmp.lt.u32.totalorder %s2946_s3, %s3003_s15 }
 0x772   : > { %p2153_p10 = scmp.lt.u32.totalorder %s2151_s23, %s2147_s5  ;;  %p2155_p12 = scmp.lt.u32.totalorder %s2147_s5, %s2946_s3 }
 0x773   : > { %p2149_p7 = pnand %p2148_p4, %p2337_p5 }
 0x774   : > { %p2154_p11 = por %p2153_p10, %p2152_p9 }
 0x775   : > { %p2150_p8 = pneg %p2149_p7 }
 0x776   : > { %p2156_p13 = por %p2155_p12, %p2154_p11 }
 0x778   : > { %p2157_p0 = pnand %p2156_p13, %p2150_p8 }
 0x77a   : > { %2160 = shalt.err (!%p2157_p0)
}
 0x77b   : > { %2026 = dma.vmem_to_hbm [thread:$0]  (%p2337_p5), %s2948_s17, 256, %s2946_s3, %s1904_s0  }
 0x77c PF: > { %p2032_p1 = scmp.ge.s32.totalorder %s2195_s21, 2  ;;  %s1930_s4 = sand.u32 1, %s2183_s18  }
 0x77d   : > { %s1931_s22 = scalar_lea.sflag [#allocation6], %s1930_s4 }
 0x77e   : > { %p2029_p2 = pnand %p2032_p1, %p2341_p6 }
 0x780   : > { %2178 = dma.done.wait (!%p2029_p2), %s1931_s22, 256  }
 0x781   : > { %2180 = vsyncadd (!%p2029_p2), %s1931_s22, 4294967040  ;;  %p25_p3 = scmp.ge.s32.totalorder %s2324_s24, 4   ;;  %s3042_s18 = smov %s2187_s19 }
 0x782   : > { %s3043_s19 = smov %s2191_s20  ;;  %s3044_s20 = smov %s2335_s27 }
 0x783   : > { %s3045_s21 = smov %s2324_s24  ;;  %27 = sbr.rel (!%p25_p3) target bundleno = 10 (0xa), region = 118 }
 0x78a   :  { %1936 = vsyncpa [#allocation6], 1 }
 0x78b   :  { %1938 = vsyncpa [#allocation6 + $0x1], 1 }

</bundles_post_ra>
